<compile_context>
chip_gen: v7x
topology: tpu7x:2x2x1
jax: 0.10.0
libtpu: 0.0.40
codegen_flags: <defaults>
</compile_context>

<pallas_src>
import functools

import jax
import jax.numpy as jnp
from jax.experimental import pallas as pl
from jax.experimental.pallas import tpu as pltpu


def _round_up(x, m):
    return (x + m - 1) // m * m


# ---------------------------------------------------------------------------
# Stage 1: QKV projection (once per position, all heads in one wide matmul).
# ---------------------------------------------------------------------------
def _qkv_project_kernel(xq_ref, xk_ref, xv_ref,
                        wq_ref, wk_ref, wv_ref,
                        bq_ref, bk_ref, bv_ref,
                        q_ref, k_ref, v_ref,
                        *, n_heads, d_head, inv_scale, precision):
    f32 = jnp.float32

    def project(x_ref, w_ref, b_ref, o_ref, scale):
        # [tp, d_model] @ [d_model, H*D] -> [tp, H*D], f32 accumulation.
        y = jnp.dot(x_ref[0], w_ref[...], preferred_element_type=f32,
                    precision=precision)
        y = y + b_ref[...].astype(f32)
        if scale != 1.0:
            y = y * scale
        y = y.astype(o_ref.dtype)
        for h in range(n_heads):                       # static unroll / slices
            o_ref[0, h] = y[:, h * d_head:(h + 1) * d_head]

    project(xq_ref, wq_ref, bq_ref, q_ref, inv_scale)  # fold 1/attn_scale in q
    project(xk_ref, wk_ref, bk_ref, k_ref, 1.0)
    project(xv_ref, wv_ref, bv_ref, v_ref, 1.0)


# ---------------------------------------------------------------------------
# Stage 2: flash attention + output projection.
# ---------------------------------------------------------------------------
def _flash_attention_kernel(q_ref, k_ref, v_ref, wo_ref, bo_ref, out_ref,
                            m_ref, l_ref, acc_ref, zall_ref,
                            *, causal, ignore_value, tile, kv_valid,
                            n_heads, d_head, precision, approx_recip):
    qb = pl.program_id(1)
    kv = pl.program_id(2)
    n_kv = pl.num_programs(2)
    f32 = jnp.float32

    # Reset the per-(batch, q-block) flash state at the first kv block.
    @pl.when(kv == 0)
    def _():
        m_ref[...] = jnp.full(m_ref.shape, -jnp.inf, dtype=m_ref.dtype)
        l_ref[...] = jnp.zeros(l_ref.shape, dtype=l_ref.dtype)
        acc_ref[...] = jnp.zeros(acc_ref.shape, dtype=acc_ref.dtype)

    def flash_update(apply_mask):
        if apply_mask:
            rows = jax.lax.broadcasted_iota(jnp.int32, (tile, tile), 0) + qb * tile
            cols = jax.lax.broadcasted_iota(jnp.int32, (tile, tile), 1) + kv * tile
            if causal:
                keep = rows >= cols
            else:
                keep = cols < kv_valid
        for h in range(n_heads):                       # static unroll
            q = q_ref[0, h]                            # [tq, d_head]
            k = k_ref[0, h]                            # [tk, d_head]
            v = v_ref[0, h]                            # [tk, d_head]
            # Scores (1/attn_scale already folded into q); f32 accumulation.
            s = jax.lax.dot_general(
                q, k, dimension_numbers=(((1,), (1,)), ((), ())),
                preferred_element_type=f32, precision=precision)
            if apply_mask:
                s = jnp.where(keep, s, ignore_value)
            m_prev = m_ref[h]
            m_new = jnp.maximum(m_prev, jnp.max(s, axis=-1, keepdims=True))
            alpha = jnp.exp(m_prev - m_new)
            p = jnp.exp(s - m_new)                     # unnormalised, f32
            l_ref[h] = alpha * l_ref[h] + jnp.sum(p, axis=-1, keepdims=True)
            acc_ref[h] = alpha * acc_ref[h] + jnp.dot(
                p.astype(v.dtype), v, preferred_element_type=f32,
                precision=precision)
            m_ref[h] = m_new

    if causal:
        # Diagonal block: element mask.  Below diagonal: unmasked.  Above
        # diagonal: fully masked -> skipped (and its DMA is clamped away by
        # the index_map).
        @pl.when(kv == qb)
        def _():
            flash_update(True)

        @pl.when(kv < qb)
        def _():
            flash_update(False)
    elif kv_valid is not None:
        is_last = kv == n_kv - 1

        @pl.when(is_last)
        def _():
            flash_update(True)

        @pl.when(jnp.logical_not(is_last))
        def _():
            flash_update(False)
    else:
        flash_update(False)

    # Finalize once per (batch, q-block): normalise, concat heads, one
    # full-depth [tq, H*D] @ [H*D, d_model] matmul, add b_O.
    @pl.when(kv == n_kv - 1)
    def _():
        for h in range(n_heads):
            z = acc_ref[h] * pl.reciprocal(l_ref[h], approx=approx_recip)
            zall_ref[:, h * d_head:(h + 1) * d_head] = z
        out = jnp.dot(zall_ref[...].astype(wo_ref.dtype), wo_ref[...],
                      preferred_element_type=f32, precision=precision)
        out = out + bo_ref[...].astype(f32)
        out_ref[0] = out.astype(out_ref.dtype)


# ---------------------------------------------------------------------------
# Wrapper
# ---------------------------------------------------------------------------
def attention_forward(query_input, key_input, value_input,
                      W_Q, W_K, W_V, b_Q, b_K, b_V, W_O, b_O,
                      *, attn_scale=None, causal=True, ignore_value=-1e5,
                      out_dtype=None, q_tile=256, precision=None,
                      vmem_limit_bytes=64 * 1024 * 1024):
    """Fused multi-head attention forward (transformer_lens Attention).

    query_input/key_input/value_input: [batch, pos, d_model]
    W_Q/W_K/W_V: [n_heads, d_model, d_head]   b_Q/b_K/b_V: [n_heads, d_head]
    W_O:         [n_heads, d_head, d_model]   b_O:         [d_model]
    Returns [batch, pos, d_model] in `out_dtype` (default: input dtype).
    """
    batch, pos, d_model = query_input.shape
    n_heads, d_model_w, d_head = W_Q.shape
    assert d_model_w == d_model, "W_Q d_model mismatch"

    if attn_scale is None:
        attn_scale = float(d_head) ** 0.5              # cfg.use_attn_scale=True
    if out_dtype is None:
        out_dtype = query_input.dtype                  # cfg.dtype
    proj_dtype = W_Q.dtype
    hd = n_heads * d_head

    # Sequence tile (multiple of 8 sublanes); pad pos up to a multiple of it.
    tile = int(min(int(q_tile), _round_up(pos, 8)))
    tile = max(8, (tile // 8) * 8)
    pos_pad = _round_up(pos, tile)
    pad = pos_pad - pos
    n_blk = pos_pad // tile

    if pad:
        pad_cfg = ((0, 0), (0, pad), (0, 0))
        query_input = jnp.pad(query_input, pad_cfg)
        key_input = jnp.pad(key_input, pad_cfg)
        value_input = jnp.pad(value_input, pad_cfg)

    # Flatten weights: [H, M, D] -> [M, H*D] (wide-N projection matmuls) and
    # [H, D, M] -> [H*D, M] (full-depth output contraction).
    wq = jnp.transpose(W_Q, (1, 0, 2)).reshape(d_model, hd)
    wk = jnp.transpose(W_K, (1, 0, 2)).reshape(d_model, hd)
    wv = jnp.transpose(W_V, (1, 0, 2)).reshape(d_model, hd)
    wo = W_O.reshape(hd, d_model)
    bq = b_Q.reshape(1, hd)
    bk = b_K.reshape(1, hd)
    bv = b_V.reshape(1, hd)
    bo = b_O.reshape(1, d_model)

    # ------------------------------------------------------------------ QKV
    proj_kernel = functools.partial(
        _qkv_project_kernel, n_heads=n_heads, d_head=d_head,
        inv_scale=1.0 / float(attn_scale), precision=precision)

    qkv_shape = jax.ShapeDtypeStruct((batch, n_heads, pos_pad, d_head), proj_dtype)
    x_spec = pl.BlockSpec((1, tile, d_model), lambda b, p: (b, p, 0))
    w_spec = pl.BlockSpec((d_model, hd), lambda b, p: (0, 0))
    b_spec = pl.BlockSpec((1, hd), lambda b, p: (0, 0))
    o_spec = pl.BlockSpec((1, n_heads, tile, d_head), lambda b, p: (b, 0, p, 0))

    q, k, v = pl.pallas_call(
        proj_kernel,
        out_shape=(qkv_shape, qkv_shape, qkv_shape),
        grid_spec=pltpu.PrefetchScalarGridSpec(
            num_scalar_prefetch=0,
            grid=(batch, n_blk),
            in_specs=[x_spec, x_spec, x_spec,
                      w_spec, w_spec, w_spec,
                      b_spec, b_spec, b_spec],
            out_specs=(o_spec, o_spec, o_spec)),
        compiler_params=pltpu.CompilerParams(
            dimension_semantics=("parallel", "parallel"),
            vmem_limit_bytes=vmem_limit_bytes),
    )(query_input, key_input, value_input, wq, wk, wv, bq, bk, bv)

    # ------------------------------------------------------ flash attention
    # Under causal masking, padded key columns are never attended to by real
    # query rows, so an explicit key-length mask is only needed when acausal.
    kv_valid = pos if (pad and not causal) else None
    approx_recip = precision is not jax.lax.Precision.HIGHEST

    attn_kernel = functools.partial(
        _flash_attention_kernel, causal=bool(causal),
        ignore_value=float(ignore_value), tile=tile, kv_valid=kv_valid,
        n_heads=n_heads, d_head=d_head, precision=precision,
        approx_recip=approx_recip)

    if causal:
        # Fully-masked kv blocks re-use the previously fetched block -> no DMA.
        kv_index = lambda b, qb, kv: (b, 0, jnp.minimum(kv, qb), 0)
    else:
        kv_index = lambda b, qb, kv: (b, 0, kv, 0)

    out = pl.pallas_call(
        attn_kernel,
        out_shape=jax.ShapeDtypeStruct((batch, pos_pad, d_model), out_dtype),
        grid_spec=pltpu.PrefetchScalarGridSpec(
            num_scalar_prefetch=0,
            grid=(batch, n_blk, n_blk),
            in_specs=[
                pl.BlockSpec((1, n_heads, tile, d_head),
                             lambda b, qb, kv: (b, 0, qb, 0)),        # q (kv-resident)
                pl.BlockSpec((1, n_heads, tile, d_head), kv_index),   # k
                pl.BlockSpec((1, n_heads, tile, d_head), kv_index),   # v
                pl.BlockSpec((hd, d_model), lambda b, qb, kv: (0, 0)),  # W_O (resident)
                pl.BlockSpec((1, d_model), lambda b, qb, kv: (0, 0)),   # b_O
            ],
            out_specs=pl.BlockSpec((1, tile, d_model),
                                   lambda b, qb, kv: (b, qb, 0)),
            scratch_shapes=[
                pltpu.VMEM((n_heads, tile, 1), jnp.float32),        # running max
                pltpu.VMEM((n_heads, tile, 1), jnp.float32),        # running sum
                pltpu.VMEM((n_heads, tile, d_head), jnp.float32),   # unnormalised z
                pltpu.VMEM((tile, hd), jnp.float32),                # concat-head z
            ]),
        compiler_params=pltpu.CompilerParams(
            dimension_semantics=("parallel", "parallel", "arbitrary"),
            vmem_limit_bytes=vmem_limit_bytes),
    )(q, k, v, wo, bo)

    if pad:
        out = out[:, :pos, :]
    return out


# ---------------------------------------------------------------------------
# Pure-JAX reference (mirrors Attention.forward)
# ---------------------------------------------------------------------------
def _reference(q_in, k_in, v_in, W_Q, W_K, W_V, b_Q, b_K, b_V, W_O, b_O,
               *, attn_scale, ignore_value=-1e5, compute_dtype=jnp.float32):
    f32 = jnp.float32
    hi = jax.lax.Precision.HIGHEST

    def proj(x, w, b):
        y = jnp.einsum('bpm,hmd->bphd', x.astype(f32), w.astype(f32),
                       precision=hi) + b.astype(f32)
        return y.astype(compute_dtype)

    q = proj(q_in, W_Q, b_Q)
    k = proj(k_in, W_K, b_K)
    v = proj(v_in, W_V, b_V)
    scores = jnp.einsum('bqhd,bkhd->bhqk', q.astype(f32), k.astype(f32),
                        precision=hi) / attn_scale
    pos = q.shape[1]
    causal = jnp.tril(jnp.ones((pos, pos), dtype=bool))
    scores = jnp.where(causal[None, None], scores, ignore_value)
    pattern = jax.nn.softmax(scores, axis=-1).astype(compute_dtype)
    z = jnp.einsum('bkhd,bhqk->bqhd', v.astype(f32), pattern.astype(f32),
                   precision=hi).astype(compute_dtype)
    out = jnp.einsum('bqhd,hdm->bqm', z.astype(f32), W_O.astype(f32),
                     precision=hi) + b_O.astype(f32)
    return out


if __name__ == "__main__":
    HIGHEST = jax.lax.Precision.HIGHEST

    def make_params(key, d_model, n_heads, d_head, dtype):
        ks = jax.random.split(key, 8)
        W_Q = (jax.random.normal(ks[0], (n_heads, d_model, d_head), jnp.float32)
               / d_model ** 0.5).astype(dtype)
        W_K = (jax.random.normal(ks[1], (n_heads, d_model, d_head), jnp.float32)
               / d_model ** 0.5).astype(dtype)
        W_V = (jax.random.normal(ks[2], (n_heads, d_model, d_head), jnp.float32)
               / d_model ** 0.5).astype(dtype)
        W_O = (jax.random.normal(ks[3], (n_heads, d_head, d_model), jnp.float32)
               / d_head ** 0.5).astype(dtype)
        b_Q = (0.1 * jax.random.normal(ks[4], (n_heads, d_head), jnp.float32)).astype(dtype)
        b_K = (0.1 * jax.random.normal(ks[5], (n_heads, d_head), jnp.float32)).astype(dtype)
        b_V = (0.1 * jax.random.normal(ks[6], (n_heads, d_head), jnp.float32)).astype(dtype)
        b_O = (0.1 * jax.random.normal(ks[7], (d_model,), jnp.float32)).astype(dtype)
        return W_Q, W_K, W_V, b_Q, b_K, b_V, W_O, b_O

    # ---- Test 1: f32, exact-precision path (single block + tiled/causal-skip).
    batch, pos, d_model, n_heads, d_head = 2, 16, 32, 4, 8
    attn_scale = float(d_head) ** 0.5
    kx, kx2, kx3, kp = jax.random.split(jax.random.PRNGKey(0), 4)
    x = jax.random.normal(kx, (batch, pos, d_model), jnp.float32)
    params = make_params(kp, d_model, n_heads, d_head, jnp.float32)
    ref = _reference(x, x, x, *params, attn_scale=attn_scale)

    out = attention_forward(x, x, x, *params, attn_scale=attn_scale,
                            precision=HIGHEST)
    out = jax.block_until_ready(out)
    assert out.shape == (batch, pos, d_model) and out.dtype == jnp.float32
    assert jnp.allclose(out, ref, atol=2e-4, rtol=2e-4), "f32 single-block mismatch"

    out_t = attention_forward(x, x, x, *params, attn_scale=attn_scale,
                              precision=HIGHEST, q_tile=8)   # 2 q / 2 kv blocks
    out_t = jax.block_until_ready(out_t)
    assert jnp.allclose(out_t, ref, atol=2e-4, rtol=2e-4), "f32 tiled mismatch"

    # ---- Test 2: padded-tail path (pos=20 -> padded to 24, 3 blocks of 8).
    pos2 = 20
    x2 = jax.random.normal(kx2, (batch, pos2, d_model), jnp.float32)
    ref2 = _reference(x2, x2, x2, *params, attn_scale=attn_scale)
    out2 = attention_forward(x2, x2, x2, *params, attn_scale=attn_scale,
                             precision=HIGHEST, q_tile=8)
    out2 = jax.block_until_ready(out2)
    assert out2.shape == (batch, pos2, d_model)
    assert jnp.allclose(out2, ref2, atol=2e-4, rtol=2e-4), "padded-tail mismatch"

    # ---- Test 3: bf16 fast path (single-pass MXU, f32 softmax), smoke check.
    b3, p3, m3, h3, d3 = 2, 128, 64, 2, 32
    scale3 = float(d3) ** 0.5
    k3p, _ = jax.random.split(kx3)
    x3 = jax.random.normal(kx3, (b3, p3, m3), jnp.float32).astype(jnp.bfloat16)
    params3 = make_params(k3p, m3, h3, d3, jnp.bfloat16)
    ref3 = _reference(x3, x3, x3, *params3, attn_scale=scale3,
                      compute_dtype=jnp.bfloat16)
    out3 = attention_forward(x3, x3, x3, *params3, attn_scale=scale3, q_tile=64)
    out3 = jax.block_until_ready(out3)
    assert out3.shape == (b3, p3, m3) and out3.dtype == jnp.bfloat16
    assert jnp.allclose(out3.astype(jnp.float32), ref3,
                        atol=5e-2, rtol=5e-2), "bf16 fast-path mismatch"

    print("KERNEL_OK")
</pallas_src>

<mosaic_0001>
module attributes {stable_mosaic.version = 11 : i64} {
  func.func @_qkv_project_kernel(%arg0: i32, %arg1: i32, %arg2: memref<1x16x32xf32, #tpu.memory_space<vmem>>, %arg3: memref<1x16x32xf32, #tpu.memory_space<vmem>>, %arg4: memref<1x16x32xf32, #tpu.memory_space<vmem>>, %arg5: memref<32x32xf32, #tpu.memory_space<vmem>>, %arg6: memref<32x32xf32, #tpu.memory_space<vmem>>, %arg7: memref<32x32xf32, #tpu.memory_space<vmem>>, %arg8: memref<1x32xf32, #tpu.memory_space<vmem>>, %arg9: memref<1x32xf32, #tpu.memory_space<vmem>>, %arg10: memref<1x32xf32, #tpu.memory_space<vmem>>, %arg11: memref<1x4x16x8xf32, #tpu.memory_space<vmem>>, %arg12: memref<1x4x16x8xf32, #tpu.memory_space<vmem>>, %arg13: memref<1x4x16x8xf32, #tpu.memory_space<vmem>>) attributes {dimension_semantics = [#tpu.dimension_semantics<parallel>, #tpu.dimension_semantics<parallel>], iteration_bounds = array<i64: 2, 1>, scalar_prefetch = 0 : i64, scratch_operands = 0 : i64, tpu.core_type = #tpu.core_type<tc>, window_params = [{transform_indices = @transform_0, window_bounds = array<i64: 1, 16, 32>}, {transform_indices = @transform_1, window_bounds = array<i64: 1, 16, 32>}, {transform_indices = @transform_2, window_bounds = array<i64: 1, 16, 32>}, {pipeline_mode = #tpu.pipeline_mode<synchronous>, transform_indices = @transform_3, window_bounds = array<i64: 32, 32>}, {pipeline_mode = #tpu.pipeline_mode<synchronous>, transform_indices = @transform_4, window_bounds = array<i64: 32, 32>}, {pipeline_mode = #tpu.pipeline_mode<synchronous>, transform_indices = @transform_5, window_bounds = array<i64: 32, 32>}, {pipeline_mode = #tpu.pipeline_mode<synchronous>, transform_indices = @transform_6, window_bounds = array<i64: 1, 32>}, {pipeline_mode = #tpu.pipeline_mode<synchronous>, transform_indices = @transform_7, window_bounds = array<i64: 1, 32>}, {pipeline_mode = #tpu.pipeline_mode<synchronous>, transform_indices = @transform_8, window_bounds = array<i64: 1, 32>}, {transform_indices = @transform_9, window_bounds = array<i64: 1, 4, 16, 8>}, {transform_indices = @transform_10, window_bounds = array<i64: 1, 4, 16, 8>}, {transform_indices = @transform_11, window_bounds = array<i64: 1, 4, 16, 8>}]} {
    %c0 = arith.constant 0 : index
    %c0_0 = arith.constant 0 : index
    %c0_1 = arith.constant 0 : index
    %0 = vector.load %arg2[%c0, %c0_0, %c0_1] : memref<1x16x32xf32, #tpu.memory_space<vmem>>, vector<1x16x32xf32>
    %1 = vector.shape_cast %0 : vector<1x16x32xf32> to vector<16x32xf32>
    %c0_2 = arith.constant 0 : index
    %c0_3 = arith.constant 0 : index
    %2 = vector.load %arg5[%c0_2, %c0_3] : memref<32x32xf32, #tpu.memory_space<vmem>>, vector<32x32xf32>
    %cst = arith.constant dense<0.000000e+00> : vector<16x32xf32>
    %3 = tpu.matmul %1, %2, %cst {dimension_numbers = #tpu.dot_dimension_numbers<[1], [0], [0], [1], [0, 0, 1, 1], [], []>, precision = #tpu.contract_precision<fp32>} : vector<16x32xf32>, vector<32x32xf32>, vector<16x32xf32> -> vector<16x32xf32>
    %c0_4 = arith.constant 0 : index
    %c0_5 = arith.constant 0 : index
    %4 = vector.load %arg8[%c0_4, %c0_5] : memref<1x32xf32, #tpu.memory_space<vmem>>, vector<1x32xf32>
    %5 = vector.broadcast %4 : vector<1x32xf32> to vector<16x32xf32>
    %6 = arith.addf %3, %5 : vector<16x32xf32>
    %cst_6 = arith.constant 0.353553385 : f32
    %7 = vector.broadcast %cst_6 : f32 to vector<16x32xf32>
    %8 = arith.mulf %6, %7 : vector<16x32xf32>
    %9 = vector.extract_strided_slice %8 {offsets = [0, 0], sizes = [16, 8], strides = [1, 1]} : vector<16x32xf32> to vector<16x8xf32>
    %c0_7 = arith.constant 0 : index
    %c0_8 = arith.constant 0 : index
    %c0_9 = arith.constant 0 : index
    %c0_10 = arith.constant 0 : index
    %10 = vector.load %arg11[%c0_7, %c0_8, %c0_9, %c0_10] : memref<1x4x16x8xf32, #tpu.memory_space<vmem>>, vector<1x1x16x8xf32>
    %11 = vector.shape_cast %10 : vector<1x1x16x8xf32> to vector<16x8xf32>
    %12 = vector.shape_cast %9 : vector<16x8xf32> to vector<1x1x16x8xf32>
    tpu.vector_store %arg11[%c0_7, %c0_8, %c0_9, %c0_10], %12 {strides = array<i32>} : memref<1x4x16x8xf32, #tpu.memory_space<vmem>>, vector<1x1x16x8xf32>,
    %13 = vector.extract_strided_slice %8 {offsets = [0, 8], sizes = [16, 8], strides = [1, 1]} : vector<16x32xf32> to vector<16x8xf32>
    %c0_11 = arith.constant 0 : index
    %c1 = arith.constant 1 : index
    %c0_12 = arith.constant 0 : index
    %c0_13 = arith.constant 0 : index
    %14 = vector.load %arg11[%c0_11, %c1, %c0_12, %c0_13] : memref<1x4x16x8xf32, #tpu.memory_space<vmem>>, vector<1x1x16x8xf32>
    %15 = vector.shape_cast %14 : vector<1x1x16x8xf32> to vector<16x8xf32>
    %16 = vector.shape_cast %13 : vector<16x8xf32> to vector<1x1x16x8xf32>
    tpu.vector_store %arg11[%c0_11, %c1, %c0_12, %c0_13], %16 {strides = array<i32>} : memref<1x4x16x8xf32, #tpu.memory_space<vmem>>, vector<1x1x16x8xf32>,
    %17 = vector.extract_strided_slice %8 {offsets = [0, 16], sizes = [16, 8], strides = [1, 1]} : vector<16x32xf32> to vector<16x8xf32>
    %c0_14 = arith.constant 0 : index
    %c2 = arith.constant 2 : index
    %c0_15 = arith.constant 0 : index
    %c0_16 = arith.constant 0 : index
    %18 = vector.load %arg11[%c0_14, %c2, %c0_15, %c0_16] : memref<1x4x16x8xf32, #tpu.memory_space<vmem>>, vector<1x1x16x8xf32>
    %19 = vector.shape_cast %18 : vector<1x1x16x8xf32> to vector<16x8xf32>
    %20 = vector.shape_cast %17 : vector<16x8xf32> to vector<1x1x16x8xf32>
    tpu.vector_store %arg11[%c0_14, %c2, %c0_15, %c0_16], %20 {strides = array<i32>} : memref<1x4x16x8xf32, #tpu.memory_space<vmem>>, vector<1x1x16x8xf32>,
    %21 = vector.extract_strided_slice %8 {offsets = [0, 24], sizes = [16, 8], strides = [1, 1]} : vector<16x32xf32> to vector<16x8xf32>
    %c0_17 = arith.constant 0 : index
    %c3 = arith.constant 3 : index
    %c0_18 = arith.constant 0 : index
    %c0_19 = arith.constant 0 : index
    %22 = vector.load %arg11[%c0_17, %c3, %c0_18, %c0_19] : memref<1x4x16x8xf32, #tpu.memory_space<vmem>>, vector<1x1x16x8xf32>
    %23 = vector.shape_cast %22 : vector<1x1x16x8xf32> to vector<16x8xf32>
    %24 = vector.shape_cast %21 : vector<16x8xf32> to vector<1x1x16x8xf32>
    tpu.vector_store %arg11[%c0_17, %c3, %c0_18, %c0_19], %24 {strides = array<i32>} : memref<1x4x16x8xf32, #tpu.memory_space<vmem>>, vector<1x1x16x8xf32>,
    %c0_20 = arith.constant 0 : index
    %c0_21 = arith.constant 0 : index
    %c0_22 = arith.constant 0 : index
    %25 = vector.load %arg3[%c0_20, %c0_21, %c0_22] : memref<1x16x32xf32, #tpu.memory_space<vmem>>, vector<1x16x32xf32>
    %26 = vector.shape_cast %25 : vector<1x16x32xf32> to vector<16x32xf32>
    %c0_23 = arith.constant 0 : index
    %c0_24 = arith.constant 0 : index
    %27 = vector.load %arg6[%c0_23, %c0_24] : memref<32x32xf32, #tpu.memory_space<vmem>>, vector<32x32xf32>
    %cst_25 = arith.constant dense<0.000000e+00> : vector<16x32xf32>
    %28 = tpu.matmul %26, %27, %cst_25 {dimension_numbers = #tpu.dot_dimension_numbers<[1], [0], [0], [1], [0, 0, 1, 1], [], []>, precision = #tpu.contract_precision<fp32>} : vector<16x32xf32>, vector<32x32xf32>, vector<16x32xf32> -> vector<16x32xf32>
    %c0_26 = arith.constant 0 : index
    %c0_27 = arith.constant 0 : index
    %29 = vector.load %arg9[%c0_26, %c0_27] : memref<1x32xf32, #tpu.memory_space<vmem>>, vector<1x32xf32>
    %30 = vector.broadcast %29 : vector<1x32xf32> to vector<16x32xf32>
    %31 = arith.addf %28, %30 : vector<16x32xf32>
    %32 = vector.extract_strided_slice %31 {offsets = [0, 0], sizes = [16, 8], strides = [1, 1]} : vector<16x32xf32> to vector<16x8xf32>
    %c0_28 = arith.constant 0 : index
    %c0_29 = arith.constant 0 : index
    %c0_30 = arith.constant 0 : index
    %c0_31 = arith.constant 0 : index
    %33 = vector.load %arg12[%c0_28, %c0_29, %c0_30, %c0_31] : memref<1x4x16x8xf32, #tpu.memory_space<vmem>>, vector<1x1x16x8xf32>
    %34 = vector.shape_cast %33 : vector<1x1x16x8xf32> to vector<16x8xf32>
    %35 = vector.shape_cast %32 : vector<16x8xf32> to vector<1x1x16x8xf32>
    tpu.vector_store %arg12[%c0_28, %c0_29, %c0_30, %c0_31], %35 {strides = array<i32>} : memref<1x4x16x8xf32, #tpu.memory_space<vmem>>, vector<1x1x16x8xf32>,
    %36 = vector.extract_strided_slice %31 {offsets = [0, 8], sizes = [16, 8], strides = [1, 1]} : vector<16x32xf32> to vector<16x8xf32>
    %c0_32 = arith.constant 0 : index
    %c1_33 = arith.constant 1 : index
    %c0_34 = arith.constant 0 : index
    %c0_35 = arith.constant 0 : index
    %37 = vector.load %arg12[%c0_32, %c1_33, %c0_34, %c0_35] : memref<1x4x16x8xf32, #tpu.memory_space<vmem>>, vector<1x1x16x8xf32>
    %38 = vector.shape_cast %37 : vector<1x1x16x8xf32> to vector<16x8xf32>
    %39 = vector.shape_cast %36 : vector<16x8xf32> to vector<1x1x16x8xf32>
    tpu.vector_store %arg12[%c0_32, %c1_33, %c0_34, %c0_35], %39 {strides = array<i32>} : memref<1x4x16x8xf32, #tpu.memory_space<vmem>>, vector<1x1x16x8xf32>,
    %40 = vector.extract_strided_slice %31 {offsets = [0, 16], sizes = [16, 8], strides = [1, 1]} : vector<16x32xf32> to vector<16x8xf32>
    %c0_36 = arith.constant 0 : index
    %c2_37 = arith.constant 2 : index
    %c0_38 = arith.constant 0 : index
    %c0_39 = arith.constant 0 : index
    %41 = vector.load %arg12[%c0_36, %c2_37, %c0_38, %c0_39] : memref<1x4x16x8xf32, #tpu.memory_space<vmem>>, vector<1x1x16x8xf32>
    %42 = vector.shape_cast %41 : vector<1x1x16x8xf32> to vector<16x8xf32>
    %43 = vector.shape_cast %40 : vector<16x8xf32> to vector<1x1x16x8xf32>
    tpu.vector_store %arg12[%c0_36, %c2_37, %c0_38, %c0_39], %43 {strides = array<i32>} : memref<1x4x16x8xf32, #tpu.memory_space<vmem>>, vector<1x1x16x8xf32>,
    %44 = vector.extract_strided_slice %31 {offsets = [0, 24], sizes = [16, 8], strides = [1, 1]} : vector<16x32xf32> to vector<16x8xf32>
    %c0_40 = arith.constant 0 : index
    %c3_41 = arith.constant 3 : index
    %c0_42 = arith.constant 0 : index
    %c0_43 = arith.constant 0 : index
    %45 = vector.load %arg12[%c0_40, %c3_41, %c0_42, %c0_43] : memref<1x4x16x8xf32, #tpu.memory_space<vmem>>, vector<1x1x16x8xf32>
    %46 = vector.shape_cast %45 : vector<1x1x16x8xf32> to vector<16x8xf32>
    %47 = vector.shape_cast %44 : vector<16x8xf32> to vector<1x1x16x8xf32>
    tpu.vector_store %arg12[%c0_40, %c3_41, %c0_42, %c0_43], %47 {strides = array<i32>} : memref<1x4x16x8xf32, #tpu.memory_space<vmem>>, vector<1x1x16x8xf32>,
    %c0_44 = arith.constant 0 : index
    %c0_45 = arith.constant 0 : index
    %c0_46 = arith.constant 0 : index
    %48 = vector.load %arg4[%c0_44, %c0_45, %c0_46] : memref<1x16x32xf32, #tpu.memory_space<vmem>>, vector<1x16x32xf32>
    %49 = vector.shape_cast %48 : vector<1x16x32xf32> to vector<16x32xf32>
    %c0_47 = arith.constant 0 : index
    %c0_48 = arith.constant 0 : index
    %50 = vector.load %arg7[%c0_47, %c0_48] : memref<32x32xf32, #tpu.memory_space<vmem>>, vector<32x32xf32>
    %cst_49 = arith.constant dense<0.000000e+00> : vector<16x32xf32>
    %51 = tpu.matmul %49, %50, %cst_49 {dimension_numbers = #tpu.dot_dimension_numbers<[1], [0], [0], [1], [0, 0, 1, 1], [], []>, precision = #tpu.contract_precision<fp32>} : vector<16x32xf32>, vector<32x32xf32>, vector<16x32xf32> -> vector<16x32xf32>
    %c0_50 = arith.constant 0 : index
    %c0_51 = arith.constant 0 : index
    %52 = vector.load %arg10[%c0_50, %c0_51] : memref<1x32xf32, #tpu.memory_space<vmem>>, vector<1x32xf32>
    %53 = vector.broadcast %52 : vector<1x32xf32> to vector<16x32xf32>
    %54 = arith.addf %51, %53 : vector<16x32xf32>
    %55 = vector.extract_strided_slice %54 {offsets = [0, 0], sizes = [16, 8], strides = [1, 1]} : vector<16x32xf32> to vector<16x8xf32>
    %c0_52 = arith.constant 0 : index
    %c0_53 = arith.constant 0 : index
    %c0_54 = arith.constant 0 : index
    %c0_55 = arith.constant 0 : index
    %56 = vector.load %arg13[%c0_52, %c0_53, %c0_54, %c0_55] : memref<1x4x16x8xf32, #tpu.memory_space<vmem>>, vector<1x1x16x8xf32>
    %57 = vector.shape_cast %56 : vector<1x1x16x8xf32> to vector<16x8xf32>
    %58 = vector.shape_cast %55 : vector<16x8xf32> to vector<1x1x16x8xf32>
    tpu.vector_store %arg13[%c0_52, %c0_53, %c0_54, %c0_55], %58 {strides = array<i32>} : memref<1x4x16x8xf32, #tpu.memory_space<vmem>>, vector<1x1x16x8xf32>,
    %59 = vector.extract_strided_slice %54 {offsets = [0, 8], sizes = [16, 8], strides = [1, 1]} : vector<16x32xf32> to vector<16x8xf32>
    %c0_56 = arith.constant 0 : index
    %c1_57 = arith.constant 1 : index
    %c0_58 = arith.constant 0 : index
    %c0_59 = arith.constant 0 : index
    %60 = vector.load %arg13[%c0_56, %c1_57, %c0_58, %c0_59] : memref<1x4x16x8xf32, #tpu.memory_space<vmem>>, vector<1x1x16x8xf32>
    %61 = vector.shape_cast %60 : vector<1x1x16x8xf32> to vector<16x8xf32>
    %62 = vector.shape_cast %59 : vector<16x8xf32> to vector<1x1x16x8xf32>
    tpu.vector_store %arg13[%c0_56, %c1_57, %c0_58, %c0_59], %62 {strides = array<i32>} : memref<1x4x16x8xf32, #tpu.memory_space<vmem>>, vector<1x1x16x8xf32>,
    %63 = vector.extract_strided_slice %54 {offsets = [0, 16], sizes = [16, 8], strides = [1, 1]} : vector<16x32xf32> to vector<16x8xf32>
    %c0_60 = arith.constant 0 : index
    %c2_61 = arith.constant 2 : index
    %c0_62 = arith.constant 0 : index
    %c0_63 = arith.constant 0 : index
    %64 = vector.load %arg13[%c0_60, %c2_61, %c0_62, %c0_63] : memref<1x4x16x8xf32, #tpu.memory_space<vmem>>, vector<1x1x16x8xf32>
    %65 = vector.shape_cast %64 : vector<1x1x16x8xf32> to vector<16x8xf32>
    %66 = vector.shape_cast %63 : vector<16x8xf32> to vector<1x1x16x8xf32>
    tpu.vector_store %arg13[%c0_60, %c2_61, %c0_62, %c0_63], %66 {strides = array<i32>} : memref<1x4x16x8xf32, #tpu.memory_space<vmem>>, vector<1x1x16x8xf32>,
    %67 = vector.extract_strided_slice %54 {offsets = [0, 24], sizes = [16, 8], strides = [1, 1]} : vector<16x32xf32> to vector<16x8xf32>
    %c0_64 = arith.constant 0 : index
    %c3_65 = arith.constant 3 : index
    %c0_66 = arith.constant 0 : index
    %c0_67 = arith.constant 0 : index
    %68 = vector.load %arg13[%c0_64, %c3_65, %c0_66, %c0_67] : memref<1x4x16x8xf32, #tpu.memory_space<vmem>>, vector<1x1x16x8xf32>
    %69 = vector.shape_cast %68 : vector<1x1x16x8xf32> to vector<16x8xf32>
    %70 = vector.shape_cast %67 : vector<16x8xf32> to vector<1x1x16x8xf32>
    tpu.vector_store %arg13[%c0_64, %c3_65, %c0_66, %c0_67], %70 {strides = array<i32>} : memref<1x4x16x8xf32, #tpu.memory_space<vmem>>, vector<1x1x16x8xf32>,
    return
  }
  func.func @transform_0(%arg0: i32, %arg1: i32) -> (i32, i32, i32) {
    %c0_i32 = arith.constant 0 : i32
    %c0_i32_0 = arith.constant 0 : i32
    return %arg0, %arg1, %c0_i32 : i32, i32, i32
  }
  func.func @transform_1(%arg0: i32, %arg1: i32) -> (i32, i32, i32) {
    %c0_i32 = arith.constant 0 : i32
    %c0_i32_0 = arith.constant 0 : i32
    return %arg0, %arg1, %c0_i32 : i32, i32, i32
  }
  func.func @transform_2(%arg0: i32, %arg1: i32) -> (i32, i32, i32) {
    %c0_i32 = arith.constant 0 : i32
    %c0_i32_0 = arith.constant 0 : i32
    return %arg0, %arg1, %c0_i32 : i32, i32, i32
  }
  func.func @transform_3(%arg0: i32, %arg1: i32) -> (i32, i32) {
    %c0_i32 = arith.constant 0 : i32
    %c0_i32_0 = arith.constant 0 : i32
    %c0_i32_1 = arith.constant 0 : i32
    return %c0_i32, %c0_i32_0 : i32, i32
  }
  func.func @transform_4(%arg0: i32, %arg1: i32) -> (i32, i32) {
    %c0_i32 = arith.constant 0 : i32
    %c0_i32_0 = arith.constant 0 : i32
    %c0_i32_1 = arith.constant 0 : i32
    return %c0_i32, %c0_i32_0 : i32, i32
  }
  func.func @transform_5(%arg0: i32, %arg1: i32) -> (i32, i32) {
    %c0_i32 = arith.constant 0 : i32
    %c0_i32_0 = arith.constant 0 : i32
    %c0_i32_1 = arith.constant 0 : i32
    return %c0_i32, %c0_i32_0 : i32, i32
  }
  func.func @transform_6(%arg0: i32, %arg1: i32) -> (i32, i32) {
    %c0_i32 = arith.constant 0 : i32
    %c0_i32_0 = arith.constant 0 : i32
    %c0_i32_1 = arith.constant 0 : i32
    return %c0_i32, %c0_i32_0 : i32, i32
  }
  func.func @transform_7(%arg0: i32, %arg1: i32) -> (i32, i32) {
    %c0_i32 = arith.constant 0 : i32
    %c0_i32_0 = arith.constant 0 : i32
    %c0_i32_1 = arith.constant 0 : i32
    return %c0_i32, %c0_i32_0 : i32, i32
  }
  func.func @transform_8(%arg0: i32, %arg1: i32) -> (i32, i32) {
    %c0_i32 = arith.constant 0 : i32
    %c0_i32_0 = arith.constant 0 : i32
    %c0_i32_1 = arith.constant 0 : i32
    return %c0_i32, %c0_i32_0 : i32, i32
  }
  func.func @transform_9(%arg0: i32, %arg1: i32) -> (i32, i32, i32, i32) {
    %c0_i32 = arith.constant 0 : i32
    %c0_i32_0 = arith.constant 0 : i32
    %c0_i32_1 = arith.constant 0 : i32
    return %arg0, %c0_i32, %arg1, %c0_i32_0 : i32, i32, i32, i32
  }
  func.func @transform_10(%arg0: i32, %arg1: i32) -> (i32, i32, i32, i32) {
    %c0_i32 = arith.constant 0 : i32
    %c0_i32_0 = arith.constant 0 : i32
    %c0_i32_1 = arith.constant 0 : i32
    return %arg0, %c0_i32, %arg1, %c0_i32_0 : i32, i32, i32, i32
  }
  func.func @transform_11(%arg0: i32, %arg1: i32) -> (i32, i32, i32, i32) {
    %c0_i32 = arith.constant 0 : i32
    %c0_i32_0 = arith.constant 0 : i32
    %c0_i32_1 = arith.constant 0 : i32
    return %arg0, %c0_i32, %arg1, %c0_i32_0 : i32, i32, i32, i32
  }
}

</mosaic_0001>

<bundles_post_ra>
// kernel: tpu_custom_call.1
= control target key start
LH: loop header
LB: loop body
LE: loop exit
PB: predicated region body
PF: predicated region fallthrough
CT: control target
= control target key end

     0   :  { %s4737_s0 = inlined_call_operand.hbm [shape: f32[2,16,32], index: 0, kind: input, shape index: {}]   ;;  %s4738_s1 = inlined_call_operand.hbm [shape: f32[2,16,32], index: 1, kind: input, shape index: {}]   ;;  %s4739_s2 = inlined_call_operand.hbm [shape: f32[2,16,32], index: 2, kind: input, shape index: {}]   ;;  %s4740_s3 = inlined_call_operand.hbm [shape: f32[32,32], index: 3, kind: input, shape index: {}]   ;;  %s4741_s4 = inlined_call_operand.hbm [shape: f32[32,32], index: 4, kind: input, shape index: {}]   ;;  %s4742_s5 = inlined_call_operand.hbm [shape: f32[32,32], index: 5, kind: input, shape index: {}]   ;;  %s4743_s6 = inlined_call_operand.hbm [shape: f32[1,32], index: 6, kind: input, shape index: {}]   ;;  %s4744_s7 = inlined_call_operand.hbm [shape: f32[1,32], index: 7, kind: input, shape index: {}]   ;;  %s4745_s8 = inlined_call_operand.hbm [shape: f32[1,32], index: 8, kind: input, shape index: {}]   ;;  %s4746_s9 = inlined_call_operand.hbm [shape: f32[2,4,16,8], index: 9, kind: output, shape index: {0}]   ;;  %s4747_s10 = inlined_call_operand.hbm [shape: f32[2,4,16,8], index: 10, kind: output, shape index: {1}]   ;;  %s4748_s11 = inlined_call_operand.hbm [shape: f32[2,4,16,8], index: 11, kind: output, shape index: {2}]  }
   0x1   :  { %4779 = sst [smem:[#allocation37_spill]] %s4738_s1 }
   0x2   :  { %4780 = sst [smem:[#allocation38_spill]] %s4740_s3 }
   0x3   :  { %4781 = sst [smem:[#allocation39_spill]] %s4742_s5 }
   0x4   :  { %4782 = sst [smem:[#allocation40_spill]] %s4744_s7 }
   0x5   :  { %4783 = sst [smem:[#allocation41_spill]] %s4746_s9 }
   0x6   :  { %4784 = sst [smem:[#allocation42_spill]] %s4747_s10 }
   0x7   :  { %4785 = sst [smem:[#allocation43_spill]] %s4748_s11 }
   0x8   :  { %17 = vsyncpa [#allocation3], 0 }
   0x9   :  { %19 = vsyncpa [#allocation3 + $0x1], 0 }
   0xa   :  { %20 = vsyncpa [#allocation6], 0 }
   0xb   :  { %22 = vsyncpa [#allocation6 + $0x1], 0 }
   0xc   :  { %23 = vsyncpa [#allocation9], 0 }
   0xd   :  { %24 = vsyncpa [#allocation12], 0 }
   0xe   :  { %25 = vsyncpa [#allocation15], 0 }
   0xf   :  { %26 = vsyncpa [#allocation4], 0 }
  0x10   :  { %28 = vsyncpa [#allocation4 + $0x1], 0 }
  0x11   :  { %29 = vsyncpa [#allocation19], 0 }
  0x12   :  { %31 = vsyncpa [#allocation19 + $0x1], 0  ;;  %s3880_s17 = smov 0   ;;  %s3882_s18 = smov 0  }
  0x13   :  { %s3884_s19 = smov 0   ;;  %s3886_s20 = smov 0  }
  0x14   :  { %s3888_s21 = smov 0   ;;  %s3890_s22 = smov 0  }
  0x15 LB: > { %4786 = sst [smem:[#allocation28_spill]] %s3779_s17  ;;  %s3911_s23 = sadd.s32 4294967295, %s3799_s22   ;;  %s3799_s22 = sphi %s3890_s22, %s37_s22   ;;  %s3795_s21 = sphi %s3888_s21, %s4842_s21   ;;  %s3791_s20 = sphi %s3886_s20, %s4841_s20   ;;  %s3787_s19 = sphi %s3884_s19, %s4845_s19   ;;  %s3783_s18 = sphi %s3882_s18, %s4844_s18   ;;  %s3779_s17 = sphi %s3880_s17, %s4843_s17  }
  0x16   : > { %4787 = sst [smem:[#allocation29_spill]] %s3791_s20  ;;  %p2679_p0 = scmp.ge.s32.totalorder %s3799_s22, 1 }
  0x17   : > { %4788 = sst [smem:[#allocation30_spill]] %s3795_s21  ;;  %p4753_p1 = scmp.eq.s32.totalorder %s3911_s23, 0 }
  0x18   : > { %4789 = sst [smem:[#allocation31_spill]] %s3799_s22  ;;  %p348_p2 = scmp.lt.s32.totalorder %s3799_s22, 3 }
  0x19   : > { %s3801_s25 = smov [#allocation8]   ;;  %s3802_s28 = smov [#allocation11]  }
  0x1a   : > { %p3916_p3 = pnand %p2679_p0, %p348_p2  ;;  %s360_s26 = sshll.u32 %s3801_s25, 4  ;;  %s3920_s26 = int_to_ptr.vmem [resolvable:$true] %s360_s26 }
  0x1b   : > { %s386_s29 = sshll.u32 %s3802_s28, 4  ;;  %s3803_s30 = smov [#allocation14]   ;;  %s3931_s29 = int_to_ptr.vmem [resolvable:$true] %s386_s29 }
  0x1c   : > { %s4790_s24 = scalar_select %p3916_p3, 1, 0 }
  0x1d   : > { %p3269_p4 = pneg %p3916_p3  ;;  %s3933_s12 = sshll.u32 %s3803_s30, 4  ;;  %s412_s12 = int_to_ptr.vmem [resolvable:$true] %s3933_s12 }
  0x1e   : > { %4791 = sst [smem:[#allocation32_spill]] %s4790_s24  ;;  %s4793_s3 = sld [smem:[#allocation38_spill]] }
  0x1f   : > { %p3927_p6 = pnand %p3269_p4, %p4753_p1 }
  0x21   : > { %s4792_s27 = scalar_select %p3927_p6, 1, 0 }
  0x22   : > { %p3943_p8 = pneg %p3927_p6 }
  0x24   : > { %s3383_s15 = scalar_lea.hbm %s4793_s3, 512 }
  0x25   : > { %p3384_p7 = scmp.ne.s32.totalorder %s4793_s3, %s3383_s15  ;;  %p3390_p11 = scmp.lt.u32.totalorder %s3383_s15, %s4793_s3 }
  0x26   : > { %s4794_s11 = scalar_select %p3943_p8, 1, 0 }
  0x27   : > { %p3386_p9 = pnand %p3943_p8, %p3384_p7 }
  0x29   : > { %p3387_p10 = pneg %p3386_p9 }
  0x2b   : > { %p3392_p12 = pnand %p3390_p11, %p3387_p10 }
  0x2d   : > { %3395 = shalt.err (!%p3392_p12)
}
  0x2e   : > { %s3396_s13 = scalar_lea.vmem %s3920_s26, 512  ;;  %p3404_p4 = scmp.lt.s32.totalorder %s3920_s26, %s3920_s26 }
  0x2f   : > { %p3397_p13 = scmp.ne.s32.totalorder %s3920_s26, %s3396_s13  ;;  %p3405_p5 = scmp.lt.s32.totalorder %s3396_s13, %s3396_s13 }
  0x31   : > { %p3399_p0 = pnand %p3397_p13, %p3943_p8  ;;  %p3406_p7 = por %p3405_p5, %p3404_p4 }
  0x33   : > { %p3400_p2 = pneg %p3399_p0 }
  0x35   : > { %p3407_p9 = pnand %p3406_p7, %p3400_p2 }
  0x37   : > { %3410 = shalt.err (!%p3407_p9)
}
  0x38   : > { %s4756_s14 = smov 128   ;;  %s4758_s15 = smov 8  }
  0x39   : > { %3272 = dma.hbm_to_vmem [thread:$0]  (!%p3927_p6), %s4793_s3, 512, %s3920_s26, [#allocation9], %s4756_s14, %s4756_s14, %s4758_s15  }
  0x3a   : > { %s4795_s5 = sld [smem:[#allocation39_spill]] }
  0x40   : > { %s3411_s13 = scalar_lea.hbm %s4795_s5, 512 }
  0x41   : > { %p3412_p5 = scmp.ne.s32.totalorder %s4795_s5, %s3411_s13  ;;  %p3418_p12 = scmp.lt.u32.totalorder %s3411_s13, %s4795_s5 }
  0x43   : > { %p3414_p10 = pnand %p3412_p5, %p3943_p8 }
  0x45   : > { %p3415_p11 = pneg %p3414_p10 }
  0x47   : > { %p3420_p13 = pnand %p3418_p12, %p3415_p11 }
  0x49   : > { %3423 = shalt.err (!%p3420_p13)
}
  0x4a   : > { %s3424_s26 = scalar_lea.vmem %s3931_s29, 512  ;;  %p3432_p7 = scmp.lt.s32.totalorder %s3931_s29, %s3931_s29 }
  0x4b   : > { %p3425_p0 = scmp.ne.s32.totalorder %s3931_s29, %s3424_s26  ;;  %p3433_p9 = scmp.lt.s32.totalorder %s3424_s26, %s3424_s26 }
  0x4d   : > { %p3427_p2 = pnand %p3425_p0, %p3943_p8  ;;  %p3434_p5 = por %p3433_p9, %p3432_p7 }
  0x4f   : > { %p3428_p4 = pneg %p3427_p2 }
  0x51   : > { %p3435_p10 = pnand %p3434_p5, %p3428_p4 }
  0x53   : > { %3438 = shalt.err (!%p3435_p10)
}
  0x54   : > { %3278 = dma.hbm_to_vmem [thread:$0]  (!%p3927_p6), %s4795_s5, 512, %s3931_s29, [#allocation12], %s4756_s14, %s4756_s14, %s4758_s15  }
  0x55   : > { %s4796_s7 = sld [smem:[#allocation40_spill]] }
  0x5b   : > { %s3439_s16 = scalar_lea.hbm %s4796_s7, 16 }
  0x5c   : > { %p3440_p11 = scmp.ne.s32.totalorder %s4796_s7, %s3439_s16  ;;  %p3446_p0 = scmp.lt.u32.totalorder %s3439_s16, %s4796_s7 }
  0x5e   : > { %p3442_p12 = pnand %p3440_p11, %p3943_p8 }
  0x60   : > { %p3443_p13 = pneg %p3442_p12 }
  0x62   : > { %p3448_p2 = pnand %p3446_p0, %p3443_p13 }
  0x64   : > { %3451 = shalt.err (!%p3448_p2)
}
  0x65   : > { %s3452_s26 = scalar_lea.vmem %s412_s12, 16  ;;  %s3459_s29 = scalar_lea.vmem %s412_s12, 32 }
  0x66   : > { %p3453_p4 = scmp.ne.s32.totalorder %s412_s12, %s3452_s26  ;;  %p3460_p5 = scmp.lt.s32.totalorder %s412_s12, %s412_s12 }
  0x67   : > { %p3461_p10 = scmp.lt.s32.totalorder %s3459_s29, %s3452_s26 }
  0x68   : > { %p3455_p7 = pnand %p3453_p4, %p3943_p8 }
  0x69   : > { %p3462_p1 = por %p3461_p10, %p3460_p5 }
  0x6a   : > { %p3456_p9 = pneg %p3455_p7 }
  0x6c   : > { %p3463_p3 = pnand %p3462_p1, %p3456_p9 }
  0x6e   : > { %3466 = shalt.err (!%p3463_p3)
}
  0x6f   : > { %3284 = dma.hbm_to_vmem [thread:$0]  (!%p3927_p6), %s4796_s7, 16, %s412_s12, [#allocation15]  }
  0x70   : > { %s4755_s20 = sadd.s32 4294967294, %s3799_s22   ;;  %s49_s24 = sadd.s32 1, %s3795_s21 }
  0x71   : > { %s58_s16 = sadd.s32 1, %s3787_s19  ;;  %p51_p1 = scmp.ge.s32.totalorder %s49_s24, 2 }
  0x72   : > { %p65_p3 = scmp.ne.s32.totalorder %s3787_s19, %s3783_s18  ;;  %p66_p11 = scmp.eq.s32.totalorder %s3799_s22, 0 }
  0x73   : > { %p71_p12 = scmp.ne.s32.totalorder %s3783_s18, %s3779_s17  ;;  %s4847_s24 = smov (%p51_p1, %s49_s24), 0 }
  0x74   : > { %4797 = sst [smem:[#allocation33_spill]] %s4847_s24  ;;  %p4022_p13 = por %p66_p11, %p65_p3 }
  0x75   : > { %p4799_p0 = scmp.eq.s32.totalorder %s3911_s23, 0  ;;  %s53_s28 = ssub.s32 %s3795_s21, %s4847_s24 }
  0x76   : > { %p279_p4 = scmp.eq.s32.totalorder %s3911_s23, 1  ;;  %p56_p7 = scmp.eq.s32.totalorder %s53_s28, 0 }
  0x77   : > { %p4028_p2 = por %p4799_p0, %p71_p12  ;;  %p285_p9 = scmp.eq.s32.totalorder %s4755_s20, 1 }
  0x78   : > { %p4037_p5 = por %p279_p4, %p65_p3  ;;  %p3314_p10 = scmp.lt.s32.totalorder %s3799_s22, 2 }
  0x79   : > { %s4800_s12 = scalar_select %p4028_p2, 1, 0 }
  0x7a   : > { %s4801_s30 = scalar_select %p4037_p5, 1, 0 }
  0x7b   : > { %s4043_s13 = scalar_select %p56_p7, %s3787_s19, %s58_s16  }
  0x7c   : > { %4802 = sst [smem:[#allocation34_spill]] %s4801_s30  ;;  %p4045_p1 = por %p285_p9, %p71_p12 }
  0x7d   : > { %4803 = sst [smem:[#allocation35_spill]] %s4043_s13  ;;  %s4760_s29 = sand.u32 1, %s3787_s19  }
  0x7e   : > { %s4804_s26 = scalar_select %p4045_p1, 1, 0 }
  0x7f   : > { %s4052_s9 = sshll.u32 %s4760_s29, 4  ;;  %s4055_s10 = sshll.u32 %s3795_s21, 8 }
  0x80   : > { %4805 = sst [smem:[#allocation36_spill]] %s4804_s26  ;;  %p4059_p3 = pnand %p3314_p10, %p4022_p13 }
  0x81   : > { %s456_s16 = sand.u32 1, %s3799_s22   ;;  %s4807_s1 = sld [smem:[#allocation37_spill]] }
  0x82   : > { %s4806_s28 = scalar_select %p4059_p3, 1, 0 }
  0x83   : > { %s460_s29 = scalar_lea.vmem [#allocation5], %s4052_s9  ;;  %s3806_s25 = smov [#allocation10]  }
  0x84   : > { %s469_s3 = sshll.u32 %s460_s29, 4  ;;  %s4073_s5 = sshll.u32 %s3806_s25, 4  ;;  %s4071_s3 = int_to_ptr.vmem [resolvable:$true] %s469_s3  ;;  %s374_s5 = int_to_ptr.vmem [resolvable:$true] %s4073_s5 }
  0x85   : > { %s4075_s7 = scalar_lea.sflag [#allocation6], %s456_s16  ;;  %p4081_p12 = pneg %p4059_p3 }
  0x87   : > { %s4068_s15 = scalar_lea.hbm %s4807_s1, %s4055_s10  ;;  %s3472_s21 = scalar_lea.hbm %s4807_s1, 512 }
  0x88   : > { %s3467_s24 = scalar_lea.hbm %s4068_s15, 256  ;;  %p3473_p4 = scmp.lt.u32.totalorder %s4068_s15, %s4807_s1 }
  0x89   : > { %p3468_p11 = scmp.ne.s32.totalorder %s4068_s15, %s3467_s24  ;;  %p3474_p7 = scmp.lt.u32.totalorder %s3472_s21, %s3467_s24 }
  0x8a   : > { %s4808_s14 = scalar_select %p4081_p12, 1, 0 }
  0x8b   : > { %p3470_p13 = pnand %p4081_p12, %p3468_p11  ;;  %p3475_p9 = por %p3474_p7, %p3473_p4 }
  0x8c   : > { %p3476_p10 = scmp.lt.u32.totalorder %s3467_s24, %s4068_s15 }
  0x8d   : > { %p3471_p0 = pneg %p3470_p13 }
  0x8e   : > { %p3477_p1 = por %p3476_p10, %p3475_p9 }
  0x90   : > { %p3478_p5 = pnand %p3477_p1, %p3471_p0 }
  0x92   : > { %3481 = shalt.err (!%p3478_p5)
}
  0x93   : > { %s3482_s16 = scalar_lea.vmem %s4071_s3, 256  ;;  %s3807_s20 = smov [#allocation5]  }
  0x94   : > { %p3483_p11 = scmp.ne.s32.totalorder %s4071_s3, %s3482_s16  ;;  %s3487_s29 = sshll.u32 %s3807_s20, 4  ;;  %s3488_s29 = int_to_ptr.vmem [resolvable:$false] %s3487_s29 }
  0x95   : > { %s3489_s13 = scalar_lea.vmem %s3488_s29, 512  ;;  %p3490_p6 = scmp.lt.s32.totalorder %s4071_s3, %s3488_s29 }
  0x96   : > { %p3485_p13 = pnand %p3483_p11, %p4081_p12  ;;  %p3491_p8 = scmp.lt.s32.totalorder %s3489_s13, %s3482_s16 }
  0x98   : > { %p3486_p2 = pneg %p3485_p13  ;;  %p3492_p4 = por %p3491_p8, %p3490_p6 }
  0x9a   : > { %p3493_p7 = pnand %p3492_p4, %p3486_p2 }
  0x9c   : > { %3496 = shalt.err (!%p3493_p7)
}
  0x9d   : > { %s4809_s21 = smov 8   ;;  %s4810_s24 = smov 128  }
  0x9e   : > { %3294 = dma.hbm_to_vmem [thread:$0]  (!%p4059_p3), %s4068_s15, 256, %s4071_s3, %s4075_s7, %s4810_s24, %s4810_s24, %s4809_s21  }
  0x9f   : > { %s3497_s29 = scalar_lea.hbm %s4741_s4, 512  ;;  %p4811_p8 = scmp.ne.s32.totalorder %s4794_s11, 0 }
  0xa0   : > { %p3498_p6 = scmp.ne.s32.totalorder %s4741_s4, %s3497_s29  ;;  %p3504_p1 = scmp.lt.u32.totalorder %s3497_s29, %s4741_s4 }
  0xa2   : > { %p3500_p2 = pnand %p3498_p6, %p4811_p8 }
  0xa4   : > { %p3501_p5 = pneg %p3500_p2 }
  0xa6   : > { %p3506_p0 = pnand %p3504_p1, %p3501_p5 }
  0xa8   : > { %3509 = shalt.err (!%p3506_p0)
}
  0xa9   : > { %s3510_s26 = scalar_lea.vmem %s374_s5, 512  ;;  %p3518_p13 = scmp.lt.s32.totalorder %s374_s5, %s374_s5 }
  0xaa   : > { %p3511_p9 = scmp.ne.s32.totalorder %s374_s5, %s3510_s26  ;;  %p3519_p4 = scmp.lt.s32.totalorder %s3510_s26, %s3510_s26 }
  0xac   : > { %p3513_p10 = pnand %p3511_p9, %p4811_p8  ;;  %p3520_p7 = por %p3519_p4, %p3518_p13 }
  0xae   : > { %p3514_p11 = pneg %p3513_p10 }
  0xb0   : > { %p3521_p3 = pnand %p3520_p7, %p3514_p11 }
  0xb2   : > { %3524 = shalt.err (!%p3521_p3)
}
  0xb3   : > { %p4812_p6 = scmp.ne.s32.totalorder %s4792_s27, 0  ;;  %s3808_s22 = smov [#allocation13]  }
  0xb4   : > { %s400_s15 = sshll.u32 %s3808_s22, 4  ;;  %s3809_s25 = smov [#allocation16]   ;;  %s401_s15 = int_to_ptr.vmem [resolvable:$true] %s400_s15 }
  0xb5   : > { %3275 = dma.hbm_to_vmem [thread:$0]  (!%p4812_p6), %s4741_s4, 512, %s374_s5, [#allocation9], %s4810_s24, %s4810_s24, %s4809_s21  }
  0xb6   : > { %s422_s20 = sshll.u32 %s3809_s25, 4  ;;  %s3525_s16 = scalar_lea.hbm %s4743_s6, 16  ;;  %s423_s20 = int_to_ptr.vmem [resolvable:$true] %s422_s20 }
  0xb7   : > { %p3526_p3 = scmp.ne.s32.totalorder %s4743_s6, %s3525_s16  ;;  %p3532_p1 = scmp.lt.u32.totalorder %s3525_s16, %s4743_s6 }
  0xb9   : > { %p3528_p2 = pnand %p3526_p3, %p4811_p8 }
  0xbb   : > { %p3529_p5 = pneg %p3528_p2 }
  0xbd   : > { %p3534_p0 = pnand %p3532_p1, %p3529_p5 }
  0xbf   : > { %3537 = shalt.err (!%p3534_p0)
}
  0xc0   : > { %s3538_s5 = scalar_lea.vmem %s401_s15, 16  ;;  %s3545_s3 = scalar_lea.vmem %s401_s15, 32 }
  0xc1   : > { %p3539_p9 = scmp.ne.s32.totalorder %s401_s15, %s3538_s5  ;;  %p3546_p13 = scmp.lt.s32.totalorder %s401_s15, %s401_s15 }
  0xc2   : > { %p3547_p4 = scmp.lt.s32.totalorder %s3545_s3, %s3538_s5 }
  0xc3   : > { %p3541_p10 = pnand %p3539_p9, %p4811_p8 }
  0xc4   : > { %p3548_p7 = por %p3547_p4, %p3546_p13 }
  0xc5   : > { %p3542_p11 = pneg %p3541_p10 }
  0xc7   : > { %p3549_p12 = pnand %p3548_p7, %p3542_p11 }
  0xc9   : > { %3552 = shalt.err (!%p3549_p12)
}
  0xca   : > { %3281 = dma.hbm_to_vmem [thread:$0]  (!%p4812_p6), %s4743_s6, 16, %s401_s15, [#allocation12]  }
  0xcb   : > { %s3553_s29 = scalar_lea.hbm %s4745_s8, 16 }
  0xcc   : > { %p3554_p3 = scmp.ne.s32.totalorder %s4745_s8, %s3553_s29  ;;  %p3560_p12 = scmp.lt.u32.totalorder %s3553_s29, %s4745_s8 }
  0xce   : > { %p3556_p2 = pnand %p3554_p3, %p4811_p8 }
  0xd0   : > { %p3557_p5 = pneg %p3556_p2 }
  0xd2   : > { %p3562_p1 = pnand %p3560_p12, %p3557_p5 }
  0xd4   : > { %3565 = shalt.err (!%p3562_p1)
}
  0xd5   : > { %s3566_s5 = scalar_lea.vmem %s423_s20, 16  ;;  %s3573_s15 = scalar_lea.vmem %s423_s20, 32 }
  0xd6   : > { %p3567_p0 = scmp.ne.s32.totalorder %s423_s20, %s3566_s5  ;;  %p3574_p11 = scmp.lt.s32.totalorder %s423_s20, %s423_s20 }
  0xd7   : > { %p3575_p13 = scmp.lt.s32.totalorder %s3573_s15, %s3566_s5 }
  0xd8   : > { %p3569_p9 = pnand %p3567_p0, %p4811_p8 }
  0xd9   : > { %p3576_p4 = por %p3575_p13, %p3574_p11 }
  0xda   : > { %p3570_p10 = pneg %p3569_p9 }
  0xdc   : > { %p3577_p7 = pnand %p3576_p4, %p3570_p10 }
  0xde   : > { %3580 = shalt.err (!%p3577_p7)
}
  0xdf   : > { %3287 = dma.hbm_to_vmem [thread:$0]  (!%p4812_p6), %s4745_s8, 16, %s423_s20, [#allocation15]  }
  0xe0   : > { %s4170_s30 = scalar_lea.hbm %s4737_s0, %s4055_s10  ;;  %s437_s25 = scalar_lea.vmem [#allocation2], %s4052_s9 }
  0xe1   : > { %s446_s27 = sshll.u32 %s437_s25, 4  ;;  %s4179_s16 = scalar_lea.hbm %s4739_s2, %s4055_s10  ;;  %s4173_s27 = int_to_ptr.vmem [resolvable:$true] %s446_s27 }
  0xe2   : > { %s4813_s13 = sand.u32 1, %s3787_s19   ;;  %s3581_s1 = scalar_lea.hbm %s4170_s30, 256 }
  0xe3   : > { %s4183_s20 = scalar_lea.sflag [#allocation3], %s4813_s13  ;;  %p3582_p8 = scmp.ne.s32.totalorder %s4170_s30, %s3581_s1 }
  0xe4   : > { %p4814_p6 = scmp.ne.s32.totalorder %s4808_s14, 0  ;;  %s3586_s3 = scalar_lea.hbm %s4737_s0, 512 }
  0xe5   : > { %p3587_p5 = scmp.lt.u32.totalorder %s4170_s30, %s4737_s0  ;;  %p3588_p12 = scmp.lt.u32.totalorder %s3586_s3, %s3581_s1 }
  0xe6   : > { %p3584_p3 = pnand %p3582_p8, %p4814_p6  ;;  %p3590_p0 = scmp.lt.u32.totalorder %s3581_s1, %s4170_s30 }
  0xe7   : > { %p3589_p1 = por %p3588_p12, %p3587_p5 }
  0xe8   : > { %p3585_p2 = pneg %p3584_p3 }
  0xe9   : > { %p3591_p9 = por %p3590_p0, %p3589_p1 }
  0xeb   : > { %p3592_p10 = pnand %p3591_p9, %p3585_p2 }
  0xed   : > { %3595 = shalt.err (!%p3592_p10)
}
  0xee   : > { %s3596_s10 = scalar_lea.vmem %s4173_s27, 256  ;;  %s3810_s22 = smov [#allocation2]  }
  0xef   : > { %p3597_p11 = scmp.ne.s32.totalorder %s4173_s27, %s3596_s10  ;;  %s3601_s25 = sshll.u32 %s3810_s22, 4  ;;  %s3602_s25 = int_to_ptr.vmem [resolvable:$false] %s3601_s25 }
  0xf0   : > { %s3603_s29 = scalar_lea.vmem %s3602_s25, 512  ;;  %p3604_p7 = scmp.lt.s32.totalorder %s4173_s27, %s3602_s25 }
  0xf1   : > { %p3599_p13 = pnand %p3597_p11, %p4814_p6  ;;  %p3605_p8 = scmp.lt.s32.totalorder %s3603_s29, %s3596_s10 }
  0xf3   : > { %p3600_p4 = pneg %p3599_p13  ;;  %p3606_p3 = por %p3605_p8, %p3604_p7 }
  0xf5   : > { %p3607_p5 = pnand %p3606_p3, %p3600_p4 }
  0xf7   : > { %3610 = shalt.err (!%p3607_p5)
}
  0xf8   : > { %p4815_p2 = scmp.ne.s32.totalorder %s4806_s28, 0  ;;  %s483_s26 = scalar_lea.vmem [#allocation7], %s4052_s9 }
  0xf9   : > { %s492_s13 = sshll.u32 %s483_s26, 4  ;;  %s3611_s1 = scalar_lea.hbm %s4179_s16, 256  ;;  %s4211_s13 = int_to_ptr.vmem [resolvable:$true] %s492_s13 }
  0xfa   : > { %3291 = dma.hbm_to_vmem [thread:$0]  (!%p4815_p2), %s4170_s30, 256, %s4173_s27, %s4183_s20, %s4810_s24, %s4810_s24, %s4809_s21  }
  0xfb   : > { %p3612_p12 = scmp.ne.s32.totalorder %s4179_s16, %s3611_s1  ;;  %s3616_s3 = scalar_lea.hbm %s4739_s2, 512 }
  0xfc   : > { %p3617_p9 = scmp.lt.u32.totalorder %s4179_s16, %s4739_s2  ;;  %p3618_p10 = scmp.lt.u32.totalorder %s3616_s3, %s3611_s1 }
  0xfd   : > { %p3614_p1 = pnand %p3612_p12, %p4814_p6  ;;  %p3620_p13 = scmp.lt.u32.totalorder %s3611_s1, %s4179_s16 }
  0xfe   : > { %p3619_p11 = por %p3618_p10, %p3617_p9 }
  0xff   : > { %p3615_p0 = pneg %p3614_p1 }
 0x100   : > { %p3621_p4 = por %p3620_p13, %p3619_p11 }
 0x102   : > { %p3622_p7 = pnand %p3621_p4, %p3615_p0 }
 0x104   : > { %3625 = shalt.err (!%p3622_p7)
}
 0x105   : > { %s3626_s9 = scalar_lea.vmem %s4211_s13, 256  ;;  %s3811_s30 = smov [#allocation7]  }
 0x106   : > { %p3627_p8 = scmp.ne.s32.totalorder %s4211_s13, %s3626_s9  ;;  %s3631_s27 = sshll.u32 %s3811_s30, 4  ;;  %s3632_s27 = int_to_ptr.vmem [resolvable:$false] %s3631_s27 }
 0x107   : > { %s3633_s20 = scalar_lea.vmem %s3632_s27, 512  ;;  %p3634_p12 = scmp.lt.s32.totalorder %s4211_s13, %s3632_s27 }
 0x108   : > { %p3629_p3 = pnand %p3627_p8, %p4814_p6  ;;  %p3635_p1 = scmp.lt.s32.totalorder %s3633_s20, %s3626_s9 }
 0x10a   : > { %p3630_p5 = pneg %p3629_p3  ;;  %p3636_p9 = por %p3635_p1, %p3634_p12 }
 0x10c   : > { %p3637_p10 = pnand %p3636_p9, %p3630_p5 }
 0x10e   : > { %3640 = shalt.err (!%p3637_p10)
}
 0x10f   : > { %3297 = dma.hbm_to_vmem [thread:$0]  (!%p4815_p2), %s4179_s16, 256, %s4211_s13, %s4075_s7, %s4810_s24, %s4810_s24, %s4809_s21  }
 0x110   : > { %s4816_s14 = sld [smem:[#allocation32_spill]] }
 0x116   : > { %p4817_p6 = scmp.ne.s32.totalorder %s4816_s14, 0 }
 0x117   : > { %s4241_s10 = sand.u32 (!%p4817_p6), 1, %s3783_s18   ;;  %p4818_p0 = scmp.ne.s32.totalorder (!%p4817_p6), %s4800_s12, 0 }
 0x118   : > { %504 = sbr.rel (%p4817_p6) target bundleno = 762 (0x2fa), region = 56  ;;  %s4244_s22 = sshll.u32 (!%p4817_p6), %s4241_s10, 4 }
 0x119   : > { %s507_s28 = scalar_lea.sflag (!%p4817_p6), [#allocation3], %s4241_s10  ;;  %s510_s25 = scalar_lea.vmem (!%p4817_p6), [#allocation2], %s4244_s22 }
 0x11f   : > { %3750 = dma.done.wait (%p4818_p0), %s507_s28, 256  }
 0x120   : > { %3752 = vsyncadd (%p4818_p0), %s507_s28, 4294967040  ;;  %s515_s7 = sand.u32 1, %s3911_s23   ;;  %s519_s24 = scalar_lea.vmem [#allocation5], %s4244_s22 }
 0x121   : > { %s516_s21 = scalar_lea.sflag [#allocation6], %s515_s7 }
 0x122   : > { %3754 = dma.done.wait (%p4818_p0), %s516_s21, 512  }
 0x123   : > { %3756 = vsyncadd (%p4818_p0), %s516_s21, 4294966784  ;;  %s528_s16 = scalar_lea.vmem [#allocation7], %s4244_s22  ;;  %p4819_p2 = scmp.eq.s32.totalorder %s3911_s23, 0 }
 0x125   : > { %3758 = dma.done.wait (%p4819_p2), [#allocation9], 1024   ;;  %p4820_p11 = pmov %p4819_p2 }
 0x126   : > { %p4821_p13 = pmov %p4819_p2 }
 0x127   : > { %3760 = vsyncadd (%p4820_p11), [#allocation9], 4294966272 }
 0x128   : > { %3762 = dma.done.wait (%p4821_p13), [#allocation12], 528   ;;  %p4822_p4 = pmov %p4819_p2 }
 0x129   : > { %p4823_p7 = pmov %p4819_p2 }
 0x12a   : > { %3764 = vsyncadd (%p4822_p4), [#allocation12], 4294966768 }
 0x12b   : > { %3766 = dma.done.wait (%p4823_p7), [#allocation15], 32   ;;  %p4824_p8 = pmov %p4819_p2 }
 0x12c   : > { %vm630_vm0 = vcmask 261120   ;;  %v619_v0 = vld [vmem:[#allocation8] sm:$0xff]  ;;  %v620_v1 = vld [vmem:[#allocation8 + $0x8] sm:$0xff]  ;;  %v621_v2 = vld [vmem:[#allocation8 + $0x10] sm:$0xff]  ;;  %s4528_s12 = sshll.u32 %s4241_s10, 6  ;;  %vm1167_vm1 = vcmask 64512  }
 0x12d   : > { %3768 = vsyncadd (%p4824_p8), [#allocation15], 4294967264  ;;  %v638_v3 = vand.u32 4294901760, %v619_v0  ;;  %v641_v4 = vand.u32 4294901760, %v620_v1  ;;  %v622_v5 = vld [vmem:[#allocation8 + $0x18] sm:$0xff]  ;;  %v644_v6 = vand.u32 4294901760, %v621_v2 }
 0x12e   : > { %v617_v7 = vld [vmem:[%s510_s25] sm:$0xff]  ;;  %v618_v8 = vld [vmem:[%s510_s25 + $0x8] sm:$0xff]  ;;  %v647_v9 = vand.u32 4294901760, %v622_v5  ;;  %s4531_s29 = scalar_lea.vmem [#allocation17], %s4528_s12  ;;  %s3812_s26 = smov 120  }
 0x12f   : > { %v632_v10 = vsel %vm630_vm0, %v617_v7, 0  ;;  %v635_v11 = vsel %vm630_vm0, %v618_v8, 0  ;;  %v4275_v12 = vpack.c.bf16 %v641_v4, %v638_v3  ;;  %v728_v15 = vsub.f32 %v619_v0, %v638_v3  ;;  %v4303_v29 = vld [vmem:[#allocation10] sm:$0xff]  ;;  %v4309_v37 = vld [vmem:[#allocation10 + $0x8] sm:$0xff]  ;;  %v4337_v61 = vld [vmem:[#allocation10 + $0x10] sm:$0xff]  ;;  %s3813_s13 = smov 112  }
 0x130   : > { %v4277_v13 = vand.u32 4294901760, %v632_v10  ;;  %v4279_v14 = vand.u32 4294901760, %v635_v11  ;;  %v4281_v16 = vpack.c.bf16 %v647_v9, %v644_v6  ;;  %v735_v17 = vsub.f32 %v620_v1, %v641_v4  ;;  %v4314_v42 = vld [vmem:[#allocation11] sm:$0xff]  ;;  %v4316_v43 = vld [vmem:[#allocation11 + $0x8] sm:$0xff]  ;;  %v4343_v0 = vld [vmem:[#allocation10 + $0x18] sm:$0xff]  ;;  %s3814_s1 = smov 104  }
 0x131   : > { %v4283_v18 = vsub.f32 %v621_v2, %v644_v6  ;;  %v4285_v19 = vsub.f32 %v622_v5, %v647_v9  ;;  %3054 = vmatprep.subr.bf16.mxu1 %v4275_v12  ;;  %3078 = vmatprep.subr.bf16.mxu0 %v4275_v12  ;;  %v729_v22 = vand.u32 4294901760, %v728_v15  ;;  %v1219_v41 = vand.u32 4294901760, %v4303_v29  ;;  %v1199_v46 = vld [vmem:[%s519_s24] sm:$0xff]  ;;  %v1200_v48 = vld [vmem:[%s519_s24 + $0x8] sm:$0xff]  ;;  %s4542_s5 = scalar_lea.vmem [#allocation18], %s4528_s12  ;;  %s4547_s15 = scalar_lea.vmem [#allocation20], %s4528_s12 }
 0x132   : > { %v4290_v20 = vsub.f32 %v632_v10, %v4277_v13  ;;  %v4293_v21 = vsub.f32 %v635_v11, %v4279_v14  ;;  %3056 = vmatpush3.bf16.msra.mxu1 %v4275_v12  ;;  %3080 = vmatpush3.bf16.msra.mxu0 %v4275_v12  ;;  %v736_v23 = vand.u32 4294901760, %v735_v17  ;;  %v1777_v47 = vld [vmem:[%s528_s16] sm:$0xff]  ;;  %v1222_v52 = vand.u32 4294901760, %v4309_v37  ;;  %v1778_v55 = vld [vmem:[%s528_s16 + $0x8] sm:$0xff]  ;;  %s4825_s3 = sld [smem:[#allocation29_spill]]  ;;  %s4826_s17 = sld [smem:[#allocation34_spill]] }
 0x133   : > { %v743_v24 = vand.u32 4294901760, %v4283_v18  ;;  %v750_v25 = vand.u32 4294901760, %v4285_v19  ;;  %3058 = vmatprep.subr.bf16.mxu1 %v4281_v16  ;;  %3082 = vmatprep.subr.bf16.mxu0 %v4281_v16  ;;  %v730_v28 = vsub.f32 %v728_v15, %v729_v22  ;;  %v1797_v53 = vand.u32 4294901760, %v4314_v42  ;;  %v1781_v5 = vld [vmem:[#allocation11 + $0x10] sm:$0xff]  ;;  %v1782_v11 = vld [vmem:[#allocation11 + $0x18] sm:$0xff]  ;;  %s2381_s9 = sshll.u32 %s4531_s29, 4  ;;  %s4581_s9 = int_to_ptr.vmem [resolvable:$true] %s2381_s9 }
 0x134   : > { %v708_v26 = vand.u32 4294901760, %v4290_v20  ;;  %v718_v27 = vand.u32 4294901760, %v4293_v21  ;;  %v737_v30 = vsub.f32 %v735_v17, %v736_v23  ;;  %v3085_v31 = vpack.c.bf16 %v736_v23, %v729_v22  ;;  %s4827_s20 = sld [smem:[#allocation41_spill]]  ;;  %s2356_s28 = scalar_lea.sflag [#allocation4], %s4241_s10 }
 0x135   : > { %v744_v32 = vsub.f32 %v4283_v18, %v743_v24  ;;  %v751_v33 = vsub.f32 %v4285_v19, %v750_v25  ;;  %v731_v36 = vand.u32 4294901760, %v730_v28  ;;  %v3089_v51 = vpack.c.bf16 %v750_v25, %v743_v24  ;;  %s3641_s25 = scalar_lea.vmem %s4581_s9, 1024  ;;  %s3815_s21 = smov [#allocation17]  }
 0x136   : > { %v709_v34 = vsub.f32 %v4290_v20, %v708_v26  ;;  %2896 = vmatprep.mubr.f32.mxu0 %v708_v26  ;;  %v719_v35 = vsub.f32 %v4293_v21, %v718_v27  ;;  %3060 = vmatpush3.bf16.msra.mxu1 %v4281_v16  ;;  %v738_v38 = vand.u32 4294901760, %v737_v30  ;;  %v1800_v54 = vand.u32 4294901760, %v4316_v43  ;;  %p3642_p3 = scmp.ne.s32.totalorder %s4581_s9, %s3641_s25  ;;  %s3645_s24 = sshll.u32 %s3815_s21, 4  ;;  %s3646_s24 = int_to_ptr.vmem [resolvable:$false] %s3645_s24 }
 0x137   : > { %3084 = vmatpush3.bf16.msra.mxu0 %v4281_v16  ;;  %v745_v39 = vand.u32 4294901760, %v744_v32  ;;  %v752_v40 = vand.u32 4294901760, %v751_v33  ;;  %v1213_v56 = vsel %vm630_vm0, %v1199_v46, 0  ;;  %v1791_v57 = vsel %vm630_vm0, %v1777_v47, 0  ;;  %s3647_s16 = scalar_lea.vmem %s3646_s24, 2048  ;;  %p3648_p9 = scmp.lt.s32.totalorder %s4581_s9, %s3646_s24 }
 0x138   : > { %v710_v44 = vand.u32 4294901760, %v709_v34  ;;  %v720_v45 = vand.u32 4294901760, %v719_v35  ;;  %3086 = vmatprep.subr.bf16.mxu0 %v3085_v31  ;;  %v3061_v49 = vpack.c.bf16 %v738_v38, %v731_v36  ;;  %v1216_v58 = vsel %vm630_vm0, %v1200_v48, 0  ;;  %s4570_s11 = sshll.u32 %s4825_s3, 10  ;;  %p4829_p5 = scmp.ne.s32.totalorder %s4826_s17, 0 }
 0x139   : > { %v3065_v50 = vpack.c.bf16 %v752_v40, %v745_v39  ;;  %v4335_v59 = vsub.f32 %v4303_v29, %v1219_v41  ;;  %v3069_v60 = vpack.c.bf16 %v735_v17, %v728_v15  ;;  %v4339_v62 = vand.u32 4294901760, %v1213_v56  ;;  %p3649_p10 = scmp.lt.s32.totalorder %s3647_s16, %s3641_s25 }
 0x13a   : > { %2863 = vmatprep.mubr.f32.mxu1 %v710_v44  ;;  %2897 = vmatmul.mubr.f32.vlgmr.msra.gmra.mrb[0].mxu0 %v718_v27  ;;  %v4341_v63 = vand.u32 4294901760, %v1791_v57  ;;  %v4345_v1 = vand.u32 4294901760, %v1216_v58  ;;  %v4349_v3 = vsub.f32 %v4309_v37, %v1222_v52  ;;  %v1794_v4 = vsel %vm630_vm0, %v1778_v55, 0  ;;  %s4828_s14 = smov %s4827_s20  ;;  %s4579_s22 = scalar_lea.hbm %s4827_s20, %s4570_s11 }
 0x13b   : > { %2864 = vmatmul.mubr.f32.vlgmr.msra.gmra.mrb[0].mxu1 %v720_v45  ;;  %3062 = vmatprep.subr.bf16.mxu1 %v3061_v49  ;;  %v1310_v2 = vand.u32 4294901760, %v4335_v59  ;;  %v4355_v6 = vsub.f32 %v1213_v56, %v4339_v62  ;;  %v4360_v8 = vand.u32 4294901760, %v1794_v4  ;;  %v4363_v9 = vsub.f32 %v4314_v42, %v1797_v53  ;;  %p3643_p12 = pnand %p3642_p3, %p4829_p5  ;;  %p3650_p6 = por %p3649_p10, %p3648_p9 }
 0x13c   : > { %3064 = vmatpush3.bf16.msra.mxu1 %v3061_v49  ;;  %3088 = vmatpush3.bf16.msra.mxu0 %v3085_v31  ;;  %v4358_v7 = vsub.f32 %v1791_v57, %v4341_v63  ;;  %v1225_v10 = vand.u32 4294901760, %v4337_v61  ;;  %v1317_v15 = vand.u32 4294901760, %v4349_v3  ;;  %v4368_v17 = vsub.f32 %v4316_v43, %v1800_v54 }
 0x13d   : > { %3066 = vmatprep.subr.bf16.mxu1 %v3065_v50  ;;  %3090 = vmatprep.subr.bf16.mxu0 %v3089_v51  ;;  %v3073_v22 = vpack.c.bf16 %v4285_v19, %v4283_v18  ;;  %v1228_v23 = vand.u32 4294901760, %v4343_v0  ;;  %v1888_v24 = vand.u32 4294901760, %v4363_v9  ;;  %v1803_v25 = vand.u32 4294901760, %v1781_v5  ;;  %p3644_p1 = pneg %p3643_p12 }
 0x13e   : > { %2874 = vmatprep.mubr.f32.mxu1 %v4277_v13  ;;  %2907 = vmatprep.mubr.f32.mxu0 %v4277_v13  ;;  %v1289_v26 = vand.u32 4294901760, %v4355_v6  ;;  %v1867_v27 = vand.u32 4294901760, %v4358_v7  ;;  %v1895_v28 = vand.u32 4294901760, %v4368_v17  ;;  %v1806_v30 = vand.u32 4294901760, %v1782_v11 }
 0x13f   : > { %v4379_v31 = vsub.f32 %v1216_v58, %v4345_v1  ;;  %v1311_v18 = vsub.f32 %v4335_v59, %v1310_v2  ;;  %v4385_v19 = vsub.f32 %v1794_v4, %v4360_v8  ;;  %v1318_v32 = vsub.f32 %v4349_v3, %v1317_v15  ;;  %p3651_p0 = pnand %p3650_p6, %p3644_p1 }
 0x140   : > { %3068 = vmatpush3.bf16.msra.mxu1 %v3065_v50  ;;  %3092 = vmatpush3.bf16.msra.mxu0 %v3089_v51  ;;  %v1889_v33 = vsub.f32 %v4363_v9, %v1888_v24  ;;  %v4396_v34 = vsub.f32 %v4337_v61, %v1225_v10  ;;  %v4401_v35 = vpack.c.bf16 %v1222_v52, %v1219_v41 }
 0x141   : > { %3070 = vmatprep.subr.bf16.mxu1 %v3069_v60  ;;  %3094 = vmatprep.subr.bf16.mxu0 %v4275_v12  ;;  %v1896_v36 = vsub.f32 %v4368_v17, %v1895_v28  ;;  %v4407_v37 = vpack.c.bf16 %v1800_v54, %v1797_v53  ;;  %v1290_v38 = vsub.f32 %v4355_v6, %v1289_v26  ;;  %v1299_v39 = vand.u32 4294901760, %v4379_v31 }
 0x142   : > { %v1324_v29 = vand.u32 4294901760, %v4396_v34  ;;  %v4420_v40 = vsub.f32 %v4343_v0, %v1228_v23  ;;  %v4422_v41 = vsub.f32 %v1781_v5, %v1803_v25  ;;  %v4424_v42 = vsub.f32 %v1782_v11, %v1806_v30 }
 0x143   : > { %2875 = vmatmul.mubr.f32.vlgmr.msra.gmra.mrb[0].mxu1 %v4279_v14  ;;  %2908 = vmatmul.mubr.f32.vlgmr.msra.gmra.mrb[0].mxu0 %v4279_v14  ;;  %v1312_v43 = vand.u32 4294901760, %v1311_v18  ;;  %v1319_v44 = vand.u32 4294901760, %v1318_v32  ;;  %v1877_v45 = vand.u32 4294901760, %v4385_v19  ;;  %v1890_v46 = vand.u32 4294901760, %v1889_v33 }
 0x144   : > { %3072 = vmatpush3.bf16.msra.mxu1 %v3069_v60  ;;  %3096 = vmatpush3.bf16.msra.mxu0 %v4275_v12  ;;  %v1868_v12 = vsub.f32 %v4358_v7, %v1867_v27  ;;  %v1902_v47 = vand.u32 4294901760, %v4422_v41  ;;  %v1909_v48 = vand.u32 4294901760, %v4424_v42  ;;  %v4433_v49 = vpack.c.bf16 %v1228_v23, %v1225_v10 }
 0x145   : > { %3074 = vmatprep.subr.bf16.mxu1 %v3073_v22  ;;  %3098 = vmatprep.subr.bf16.mxu0 %v4281_v16  ;;  %v4435_v50 = vpack.c.bf16 %v1806_v30, %v1803_v25  ;;  %v1291_v51 = vand.u32 4294901760, %v1290_v38  ;;  %v1300_v56 = vsub.f32 %v4379_v31, %v1299_v39  ;;  %v1878_v57 = vsub.f32 %v4385_v19, %v1877_v45 }
 0x146   : > { %2885 = vmatprep.mubr.f32.mxu1 %v4290_v20  ;;  %2918 = vmatprep.mubr.f32.mxu0 %v4277_v13  ;;  %v1897_v20 = vand.u32 4294901760, %v1896_v36  ;;  %v1331_v13 = vand.u32 4294901760, %v4420_v40  ;;  %v1869_v52 = vand.u32 4294901760, %v1868_v12  ;;  %v1903_v54 = vsub.f32 %v4422_v41, %v1902_v47 }
 0x147   : > { %v1910_v55 = vsub.f32 %v4424_v42, %v1909_v48  ;;  %v3109_v58 = vpack.c.bf16 %v1319_v44, %v1312_v43  ;;  %v1301_v4 = vand.u32 4294901760, %v1300_v56  ;;  %v1879_v5 = vand.u32 4294901760, %v1878_v57 }
 0x148   : > { %3076 = vmatpush3.bf16.msra.mxu1 %v3073_v22  ;;  %3100 = vmatpush3.bf16.msra.mxu0 %v4281_v16  ;;  %v1325_v16 = vsub.f32 %v4396_v34, %v1324_v29  ;;  %v1332_v53 = vsub.f32 %v4420_v40, %v1331_v13  ;;  %v3157_v60 = vpack.c.bf16 %v1897_v20, %v1890_v46  ;;  %v1904_v61 = vand.u32 4294901760, %v1903_v54 }
 0x149   : > { %3102 = vmatprep.subr.bf16.mxu1 %v4401_v35  ;;  %3150 = vmatprep.subr.bf16.mxu0 %v4407_v37  ;;  %v1911_v0 = vand.u32 4294901760, %v1910_v55  ;;  %v3117_v22 = vpack.c.bf16 %v4349_v3, %v4335_v59  ;;  %v3165_v23 = vpack.c.bf16 %v4368_v17, %v4363_v9  ;;  %v3121_v25 = vpack.c.bf16 %v4420_v40, %v4396_v34  ;;  %v2709_v3 = vld [vmem:[#allocation13] ss:$0 sm:$0xff] }
 0x14a   : > { %v3169_v30 = vpack.c.bf16 %v4424_v42, %v4422_v41  ;;  %v3133_v18 = vpack.c.bf16 %v1317_v15, %v1310_v2  ;;  %v3181_v32 = vpack.c.bf16 %v1895_v28, %v1888_v24  ;;  %v3137_v59 = vpack.c.bf16 %v1331_v13, %v1324_v29 }
 0x14b   : > { %2886 = vmatmul.mubr.f32.vlgmr.msra.gmra.mrb[0].mxu1 %v4293_v21  ;;  %2919 = vmatmul.mubr.f32.vlgmr.msra.gmra.mrb[0].mxu0 %v4279_v14  ;;  %v1326_v21 = vand.u32 4294901760, %v1325_v16  ;;  %v1333_v14 = vand.u32 4294901760, %v1332_v53  ;;  %v3161_v11 = vpack.c.bf16 %v1911_v0, %v1904_v61  ;;  %v3185_v2 = vpack.c.bf16 %v1909_v48, %v1902_v47 }
 0x14c   : > { %3104 = vmatpush3.bf16.msra.mxu1 %v4401_v35  ;;  %3152 = vmatpush3.bf16.msra.mxu0 %v4407_v37 }
 0x14d   : > { %3106 = vmatprep.subr.bf16.mxu1 %v4433_v49  ;;  %3154 = vmatprep.subr.bf16.mxu0 %v4435_v50  ;;  %v3113_v10 = vpack.c.bf16 %v1333_v14, %v1326_v21 }
 0x14e   : > { %2929 = vmatprep.mubr.f32.mxu1 %v1291_v51  ;;  %2995 = vmatprep.mubr.f32.mxu0 %v1869_v52 }
 0x150   : > { %3108 = vmatpush3.bf16.msra.mxu1 %v4433_v49  ;;  %3156 = vmatpush3.bf16.msra.mxu0 %v4435_v50 }
 0x151   : > { %3110 = vmatprep.subr.bf16.mxu1 %v3109_v58  ;;  %3158 = vmatprep.subr.bf16.mxu0 %v3157_v60 }
 0x153   : > { %2930 = vmatmul.mubr.f32.vlgmr.msra.gmra.mrb[2].mxu1 %v1301_v4  ;;  %2996 = vmatmul.mubr.f32.vlgmr.msra.gmra.mrb[2].mxu0 %v1879_v5 }
 0x154   : > { %3112 = vmatpush3.bf16.msra.mxu1 %v3109_v58  ;;  %3160 = vmatpush3.bf16.msra.mxu0 %v3157_v60 }
 0x155   : > { %3114 = vmatprep.subr.bf16.mxu1 %v3113_v10  ;;  %3162 = vmatprep.subr.bf16.mxu0 %v3161_v11 }
 0x156   : > { %2940 = vmatprep.mubr.f32.mxu1 %v4339_v62  ;;  %3006 = vmatprep.mubr.f32.mxu0 %v4341_v63 }
 0x158   : > { %3116 = vmatpush3.bf16.msra.mxu1 %v3113_v10  ;;  %3164 = vmatpush3.bf16.msra.mxu0 %v3161_v11 }
 0x159   : > { %3118 = vmatprep.subr.bf16.mxu1 %v3117_v22  ;;  %3166 = vmatprep.subr.bf16.mxu0 %v3165_v23 }
 0x15b   : > { %2941 = vmatmul.mubr.f32.vlgmr.msra.gmra.mrb[2].mxu1 %v4345_v1  ;;  %3007 = vmatmul.mubr.f32.vlgmr.msra.gmra.mrb[2].mxu0 %v4360_v8 }
 0x15c   : > { %3120 = vmatpush3.bf16.msra.mxu1 %v3117_v22  ;;  %3168 = vmatpush3.bf16.msra.mxu0 %v3165_v23 }
 0x15d   : > { %3122 = vmatprep.subr.bf16.mxu1 %v3121_v25  ;;  %3170 = vmatprep.subr.bf16.mxu0 %v3169_v30 }
 0x15e   : > { %2951 = vmatprep.mubr.f32.mxu1 %v4355_v6  ;;  %3017 = vmatprep.mubr.f32.mxu0 %v4358_v7 }
 0x160   : > { %3124 = vmatpush3.bf16.msra.mxu1 %v3121_v25  ;;  %3172 = vmatpush3.bf16.msra.mxu0 %v3169_v30 }
 0x161   : > { %3126 = vmatprep.subr.bf16.mxu1 %v4401_v35  ;;  %3174 = vmatprep.subr.bf16.mxu0 %v4407_v37 }
 0x163   : > { %2952 = vmatmul.mubr.f32.vlgmr.msra.gmra.mrb[2].mxu1 %v4379_v31  ;;  %3018 = vmatmul.mubr.f32.vlgmr.msra.gmra.mrb[2].mxu0 %v4385_v19 }
 0x164   : > { %3128 = vmatpush3.bf16.msra.mxu1 %v4401_v35  ;;  %3176 = vmatpush3.bf16.msra.mxu0 %v4407_v37 }
 0x165   : > { %3130 = vmatprep.subr.bf16.mxu1 %v4433_v49  ;;  %3178 = vmatprep.subr.bf16.mxu0 %v4435_v50 }
 0x166   : > { %2962 = vmatprep.mubr.f32.mxu1 %v1289_v26  ;;  %3028 = vmatprep.mubr.f32.mxu0 %v1867_v27 }
 0x168   : > { %3132 = vmatpush3.bf16.msra.mxu1 %v4433_v49  ;;  %3180 = vmatpush3.bf16.msra.mxu0 %v4435_v50 }
 0x169   : > { %3134 = vmatprep.subr.bf16.mxu1 %v3133_v18  ;;  %3182 = vmatprep.subr.bf16.mxu0 %v3181_v32 }
 0x16b   : > { %2963 = vmatmul.mubr.f32.vlgmr.msra.gmra.mrb[2].mxu1 %v1299_v39  ;;  %3029 = vmatmul.mubr.f32.vlgmr.msra.gmra.mrb[2].mxu0 %v1877_v45 }
 0x16c   : > { %3136 = vmatpush3.bf16.msra.mxu1 %v3133_v18  ;;  %3184 = vmatpush3.bf16.msra.mxu0 %v3181_v32 }
 0x16d   : > { %3138 = vmatprep.subr.bf16.mxu1 %v3137_v59  ;;  %3186 = vmatprep.subr.bf16.mxu0 %v3185_v2 }
 0x16e   : > { %2973 = vmatprep.mubr.f32.mxu1 %v4339_v62  ;;  %3039 = vmatprep.mubr.f32.mxu0 %v4341_v63 }
 0x170   : > { %3140 = vmatpush3.bf16.msra.mxu1 %v3137_v59  ;;  %3188 = vmatpush3.bf16.msra.mxu0 %v3185_v2 }
 0x171   : > { %3142 = vmatprep.subr.bf16.mxu1 %v4401_v35  ;;  %3190 = vmatprep.subr.bf16.mxu0 %v4407_v37 }
 0x173   : > { %2974 = vmatmul.mubr.f32.vlgmr.msra.gmra.mrb[2].mxu1 %v4345_v1  ;;  %3040 = vmatmul.mubr.f32.vlgmr.msra.gmra.mrb[2].mxu0 %v4360_v8 }
 0x174   : > { %3144 = vmatpush3.bf16.msra.mxu1 %v4401_v35  ;;  %3192 = vmatpush3.bf16.msra.mxu0 %v4407_v37 }
 0x175   : > { %3146 = vmatprep.subr.bf16.mxu1 %v4433_v49  ;;  %3194 = vmatprep.subr.bf16.mxu0 %v4435_v50 }
 0x176   : > { %2984 = vmatprep.mubr.f32.mxu1 %v4339_v62  ;;  %3050 = vmatprep.mubr.f32.mxu0 %v4341_v63 }
 0x178   : > { %3148 = vmatpush3.bf16.msra.mxu1 %v4433_v49  ;;  %3196 = vmatpush3.bf16.msra.mxu0 %v4435_v50 }
 0x17b   : > { %2985 = vmatmul.mubr.f32.vlgmr.msra.gmra.mrb[2].mxu1 %v4345_v1  ;;  %3051 = vmatmul.mubr.f32.vlgmr.msra.gmra.mrb[2].mxu0 %v4360_v8  ;;  %v2716_v1 = vld [vmem:[#allocation14] ss:$0 sm:$0xff]  ;;  %v2723_v8 = vld [vmem:[#allocation16] ss:$0 sm:$0xff] }
 0x21e   : > { %v2887_v6 = vpop.f32.mrb[0].mxu1  ;;  %v2920_v7 = vpop.f32.mrb[0].mxu0 }
 0x21f   : > { %v3197_v9 = vadd.f32 %v2887_v6, %v2709_v3  ;;  %v899_v15 = vpop.f32.mrb[1].mxu1  ;;  %v1155_v17 = vpop.f32.mrb[1].mxu0 }
 0x220   : > { %v3199_v62 = vadd.f32 %v2709_v3, %v899_v15 }
 0x221   : > { %v3198_v24 = vadd.f32 %v3197_v9, %v2920_v7 }
 0x222   : > { %v3200_v63 = vadd.f32 %v3199_v62, %v1155_v17 }
 0x223   : > { %v1166_v26 = vmul.f32 0.35355338, %v3198_v24 }
 0x224   : > { %v1165_v27 = vmul.f32 0.35355338, %v3200_v63 }
 0x225   : > { %1169 = vst.msk [vmem:[%s4531_s29 + $0x8] sm:$0xff] %vm1167_vm1, %v1166_v26  ;;  %1174 = vrot.lane.b32.xlu1 %v1166_v26, %s3812_s26 }
 0x226   : > { %1168 = vst.msk [vmem:[%s4531_s29] sm:$0xff] %vm1167_vm1, %v1165_v27  ;;  %1172 = vrot.lane.b32.xlu0 %v1165_v27, %s3812_s26 }
 0x229   : > { %1183 = vrot.lane.b32.xlu1 %v1166_v26, %s3813_s13 }
 0x22a   : > { %1181 = vrot.lane.b32.xlu0 %v1165_v27, %s3813_s13 }
 0x22d   : > { %1192 = vrot.lane.b32.xlu1 %v1166_v26, %s3814_s1 }
 0x22e   : > { %1190 = vrot.lane.b32.xlu0 %v1165_v27, %s3814_s1 }
 0x24e   : > { %v2986_v28 = vpop.f32.mrb[2].mxu1  ;;  %v3052_v31 = vpop.f32.mrb[2].mxu0 }
 0x24f   : > { %v3201_v19 = vadd.f32 %v2986_v28, %v2716_v1  ;;  %v3203_v33 = vadd.f32 %v3052_v31, %v2723_v8  ;;  %v1736_v34 = vpop.f32.mrb[3].mxu1  ;;  %v2314_v35 = vpop.f32.mrb[3].mxu0 }
 0x250   : > { %v3202_v36 = vadd.f32 %v2716_v1, %v1736_v34  ;;  %v3204_v37 = vadd.f32 %v2723_v8, %v2314_v35 }
 0x251   : > { %1747 = vst.msk [vmem:[%s4542_s5 + $0x8] sm:$0xff] %vm1167_vm1, %v3201_v19  ;;  %2325 = vst.msk [vmem:[%s4547_s15 + $0x8] sm:$0xff] %vm1167_vm1, %v3203_v33  ;;  %1761 = vrot.lane.b32.xlu1 %v3201_v19, %s3813_s13  ;;  %1752 = vrot.lane.b32.xlu0 %v3201_v19, %s3812_s26 }
 0x252   : > { %1746 = vst.msk [vmem:[%s4542_s5] sm:$0xff] %vm1167_vm1, %v3202_v36  ;;  %2324 = vst.msk [vmem:[%s4547_s15] sm:$0xff] %vm1167_vm1, %v3204_v37 }
 0x255   : > { %1770 = vrot.lane.b32.xlu1 %v3201_v19, %s3814_s1  ;;  %1750 = vrot.lane.b32.xlu0 %v3202_v36, %s3812_s26 }
 0x259   : > { %2330 = vrot.lane.b32.xlu1 %v3203_v33, %s3812_s26  ;;  %1768 = vrot.lane.b32.xlu0 %v3202_v36, %s3814_s1 }
 0x25d   : > { %2339 = vrot.lane.b32.xlu1 %v3203_v33, %s3813_s13  ;;  %2328 = vrot.lane.b32.xlu0 %v3204_v37, %s3812_s26 }
 0x261   : > { %1759 = vrot.lane.b32.xlu1 %v3202_v36, %s3813_s13  ;;  %2337 = vrot.lane.b32.xlu0 %v3204_v37, %s3813_s13 }
 0x265   : > { %2348 = vrot.lane.b32.xlu1 %v3203_v33, %s3814_s1  ;;  %2346 = vrot.lane.b32.xlu0 %v3204_v37, %s3814_s1 }
 0x297   : > { %v1175_v38 = vpop.permute.xlu1 %1174 }
 0x298   : > { %2711 = vst.msk [vmem:[%s4531_s29 + $0x18] sm:$0xff] %vm1167_vm1, %v1175_v38  ;;  %v1173_v12 = vpop.permute.xlu0 %1172 }
 0x299   : > { %2710 = vst.msk [vmem:[%s4531_s29 + $0x10] sm:$0xff] %vm1167_vm1, %v1173_v12 }
 0x29b   : > { %v1184_v29 = vpop.permute.xlu1 %1183 }
 0x29c   : > { %2713 = vst.msk [vmem:[%s4531_s29 + $0x28] sm:$0xff] %vm1167_vm1, %v1184_v29  ;;  %v1182_v39 = vpop.permute.xlu0 %1181 }
 0x29d   : > { %2712 = vst.msk [vmem:[%s4531_s29 + $0x20] sm:$0xff] %vm1167_vm1, %v1182_v39 }
 0x29f   : > { %v1193_v40 = vpop.permute.xlu1 %1192 }
 0x2a0   : > { %2715 = vst.msk [vmem:[%s4531_s29 + $0x38] sm:$0xff] %vm1167_vm1, %v1193_v40  ;;  %v1191_v41 = vpop.permute.xlu0 %1190 }
 0x2a1   : > { %2714 = vst.msk [vmem:[%s4531_s29 + $0x30] sm:$0xff] %vm1167_vm1, %v1191_v41 }
 0x2a2   : > { %3654 = shalt.err (!%p3651_p0)
}
 0x2a3   : > { %s3655_s12 = scalar_lea.hbm %s4579_s22, 1024  ;;  %s3659_s13 = scalar_lea.hbm %s4828_s14, 2048 }
 0x2a4   : > { %p3656_p2 = scmp.ne.s32.totalorder %s4579_s22, %s3655_s12  ;;  %p3660_p4 = scmp.lt.u32.totalorder %s4579_s22, %s4828_s14 }
 0x2a5   : > { %p3661_p7 = scmp.lt.u32.totalorder %s3659_s13, %s3655_s12  ;;  %p3663_p3 = scmp.lt.u32.totalorder %s3655_s12, %s4579_s22 }
 0x2a6   : > { %p3657_p11 = pnand %p3656_p2, %p4829_p5 }
 0x2a7   : > { %p3662_p8 = por %p3661_p7, %p3660_p4 }
 0x2a8   : > { %p3658_p13 = pneg %p3657_p11 }
 0x2a9   : > { %p3664_p12 = por %p3663_p3, %p3662_p8 }
 0x2ab   : > { %p3665_p1 = pnand %p3664_p12, %p3658_p13 }
 0x2ad   : > { %3668 = shalt.err (!%p3665_p1)
}
 0x2ae   : > { %s3816_s30 = smov 128   ;;  %s3817_s27 = smov 8  }
 0x2af   : > { %3263 = dma.vmem_to_hbm [thread:$0]  (%p4829_p5), %s4581_s9, 1024, %s4579_s22, %s2356_s28, %s3816_s30, %s3816_s30, %s3817_s27  }
 0x2b0   : > { %s2399_s10 = sshll.u32 %s4542_s5, 4  ;;  %s4830_s22 = sld [smem:[#allocation42_spill]]  ;;  %s4637_s10 = int_to_ptr.vmem [resolvable:$true] %s2399_s10 }
 0x2b1   : > { %s2417_s21 = sshll.u32 %s4547_s15, 4  ;;  %s4646_s24 = scalar_lea.sflag [#allocation19], %s515_s7  ;;  %s4675_s21 = int_to_ptr.vmem [resolvable:$true] %s2417_s21 }
 0x2b2   : > { %s3669_s16 = scalar_lea.vmem %s4637_s10, 1024  ;;  %s3818_s12 = smov [#allocation18]  }
 0x2b3   : > { %p3670_p9 = scmp.ne.s32.totalorder %s4637_s10, %s3669_s16  ;;  %s3673_s29 = sshll.u32 %s3818_s12, 4  ;;  %s3674_s29 = int_to_ptr.vmem [resolvable:$false] %s3673_s29 }
 0x2b4   : > { %s3675_s26 = scalar_lea.vmem %s3674_s29, 2048  ;;  %p3676_p0 = scmp.lt.s32.totalorder %s4637_s10, %s3674_s29 }
 0x2b5   : > { %p3671_p10 = pnand %p3670_p9, %p4829_p5  ;;  %p3677_p2 = scmp.lt.s32.totalorder %s3675_s26, %s3669_s16 }
 0x2b6   : > { %s4831_s28 = smov %s4830_s22  ;;  %s4635_s25 = scalar_lea.hbm %s4830_s22, %s4570_s11 }
 0x2b7   : > { %p3672_p6 = pneg %p3671_p10  ;;  %p3678_p11 = por %p3677_p2, %p3676_p0 }
 0x2b9   : > { %p3679_p13 = pnand %p3678_p11, %p3672_p6 }
 0x2c3   : > { %v1762_v42 = vpop.permute.xlu1 %1761  ;;  %v1753_v43 = vpop.permute.xlu0 %1752 }
 0x2c4   : > { %2720 = vst.msk [vmem:[%s4542_s5 + $0x28] sm:$0xff] %vm1167_vm1, %v1762_v42  ;;  %2718 = vst.msk [vmem:[%s4542_s5 + $0x18] sm:$0xff] %vm1167_vm1, %v1753_v43 }
 0x2c7   : > { %v1771_v44 = vpop.permute.xlu1 %1770  ;;  %v1751_v45 = vpop.permute.xlu0 %1750 }
 0x2c8   : > { %2722 = vst.msk [vmem:[%s4542_s5 + $0x38] sm:$0xff] %vm1167_vm1, %v1771_v44  ;;  %2717 = vst.msk [vmem:[%s4542_s5 + $0x10] sm:$0xff] %vm1167_vm1, %v1751_v45 }
 0x2cb   : > { %v2331_v46 = vpop.permute.xlu1 %2330  ;;  %v1769_v20 = vpop.permute.xlu0 %1768 }
 0x2cc   : > { %2725 = vst.msk [vmem:[%s4547_s15 + $0x18] sm:$0xff] %vm1167_vm1, %v2331_v46  ;;  %2721 = vst.msk [vmem:[%s4542_s5 + $0x30] sm:$0xff] %vm1167_vm1, %v1769_v20 }
 0x2cf   : > { %v2340_v13 = vpop.permute.xlu1 %2339  ;;  %v2329_v47 = vpop.permute.xlu0 %2328 }
 0x2d0   : > { %2727 = vst.msk [vmem:[%s4547_s15 + $0x28] sm:$0xff] %vm1167_vm1, %v2340_v13  ;;  %2724 = vst.msk [vmem:[%s4547_s15 + $0x10] sm:$0xff] %vm1167_vm1, %v2329_v47 }
 0x2d3   : > { %v1760_v48 = vpop.permute.xlu1 %1759  ;;  %v2338_v49 = vpop.permute.xlu0 %2337 }
 0x2d4   : > { %2719 = vst.msk [vmem:[%s4542_s5 + $0x20] sm:$0xff] %vm1167_vm1, %v1760_v48  ;;  %2726 = vst.msk [vmem:[%s4547_s15 + $0x20] sm:$0xff] %vm1167_vm1, %v2338_v49 }
 0x2d5   : > { %3682 = shalt.err (!%p3679_p13)
}
 0x2d6   : > { %s3683_s23 = scalar_lea.hbm %s4635_s25, 1024  ;;  %s3687_s13 = scalar_lea.hbm %s4831_s28, 2048 }
 0x2d7   : > { %p3684_p4 = scmp.ne.s32.totalorder %s4635_s25, %s3683_s23  ;;  %p3688_p3 = scmp.lt.u32.totalorder %s4635_s25, %s4831_s28 }
 0x2d8   : > { %p3689_p12 = scmp.lt.u32.totalorder %s3687_s13, %s3683_s23  ;;  %p3691_p9 = scmp.lt.u32.totalorder %s3683_s23, %s4635_s25 }
 0x2d9   : > { %p3685_p7 = pnand %p3684_p4, %p4829_p5 }
 0x2da   : > { %p3690_p1 = por %p3689_p12, %p3688_p3 }
 0x2db   : > { %p3686_p8 = pneg %p3685_p7 }
 0x2dc   : > { %p3692_p10 = por %p3691_p9, %p3690_p1 }
 0x2de   : > { %p3693_p6 = pnand %p3692_p10, %p3686_p8 }
 0x2e0   : > { %3696 = shalt.err (!%p3693_p6)
}
 0x2e1   : > { %3264 = dma.vmem_to_hbm [thread:$0]  (%p4829_p5), %s4637_s10, 1024, %s4635_s25, %s4646_s24, %s3816_s30, %s3816_s30, %s3817_s27   ;;  %v2349_v50 = vpop.permute.xlu1 %2348  ;;  %v2347_v51 = vpop.permute.xlu0 %2346 }
 0x2e2   : > { %s4832_s22 = sld [smem:[#allocation43_spill]]  ;;  %2729 = vst.msk [vmem:[%s4547_s15 + $0x38] sm:$0xff] %vm1167_vm1, %v2349_v50  ;;  %2728 = vst.msk [vmem:[%s4547_s15 + $0x30] sm:$0xff] %vm1167_vm1, %v2347_v51  ;;  %s3697_s29 = scalar_lea.vmem %s4675_s21, 1024 }
 0x2e3   : > { %p3698_p0 = scmp.ne.s32.totalorder %s4675_s21, %s3697_s29  ;;  %s3819_s10 = smov [#allocation20]  }
 0x2e4   : > { %s3701_s25 = sshll.u32 %s3819_s10, 4  ;;  %s3702_s25 = int_to_ptr.vmem [resolvable:$false] %s3701_s25 }
 0x2e5   : > { %p3699_p2 = pnand %p3698_p0, %p4829_p5  ;;  %s3703_s26 = scalar_lea.vmem %s3702_s25, 2048 }
 0x2e6   : > { %p3704_p13 = scmp.lt.s32.totalorder %s4675_s21, %s3702_s25  ;;  %p3705_p4 = scmp.lt.s32.totalorder %s3703_s26, %s3697_s29 }
 0x2e7   : > { %p3700_p11 = pneg %p3699_p2 }
 0x2e8   : > { %s4833_s16 = smov %s4832_s22  ;;  %s4681_s12 = scalar_lea.hbm %s4832_s22, %s4570_s11 }
 0x2e9   : > { %p3706_p7 = por %p3705_p4, %p3704_p13 }
 0x2eb   : > { %p3707_p8 = pnand %p3706_p7, %p3700_p11 }
 0x2ed   : > { %3710 = shalt.err (!%p3707_p8)
}
 0x2ee   : > { %s3711_s15 = scalar_lea.hbm %s4681_s12, 1024  ;;  %s3715_s7 = scalar_lea.hbm %s4833_s16, 2048 }
 0x2ef   : > { %p3712_p3 = scmp.ne.s32.totalorder %s4681_s12, %s3711_s15  ;;  %p3716_p9 = scmp.lt.u32.totalorder %s4681_s12, %s4833_s16 }
 0x2f0   : > { %p3717_p10 = scmp.lt.u32.totalorder %s3715_s7, %s3711_s15  ;;  %p3719_p0 = scmp.lt.u32.totalorder %s3711_s15, %s4681_s12 }
 0x2f1   : > { %p3713_p12 = pnand %p3712_p3, %p4829_p5 }
 0x2f2   : > { %p3718_p6 = por %p3717_p10, %p3716_p9 }
 0x2f3   : > { %p3714_p1 = pneg %p3713_p12 }
 0x2f4   : > { %p3720_p2 = por %p3719_p0, %p3718_p6 }
 0x2f6   : > { %p3721_p11 = pnand %p3720_p2, %p3714_p1 }
 0x2f8   : > { %3724 = shalt.err (!%p3721_p11)
}
 0x2f9   : > { %3265 = dma.vmem_to_hbm [thread:$0]  (%p4829_p5), %s4675_s21, 1024, %s4681_s12, %s4646_s24, %s3816_s30, %s3816_s30, %s3817_s27  }
 0x2fa PF: > { %s4834_s1 = sld [smem:[#allocation28_spill]]  ;;  %s4835_s3 = sld [smem:[#allocation36_spill]] }
 0x2fb   : > { %s4836_s9 = sld [smem:[#allocation31_spill]] }
 0x300   : > { %s2432_s20 = sand.u32 1, %s4834_s1   ;;  %p4837_p13 = scmp.ne.s32.totalorder %s4835_s3, 0 }
 0x301   : > { %p4838_p4 = scmp.ge.s32.totalorder %s4836_s9, 2  ;;  %s2433_s22 = scalar_lea.sflag [#allocation4], %s2432_s20 }
 0x303   : > { %p3299_p7 = pnand %p4838_p4, %p4837_p13 }
 0x305   : > { %3770 = dma.done.wait (!%p3299_p7), %s2433_s22, 1024  }
 0x306   : > { %3772 = vsyncadd (!%p3299_p7), %s2433_s22, 4294966272  ;;  %s4839_s17 = sadd.s32 4294967294, %s4836_s9  }
 0x307   : > { %s2441_s29 = sand.u32 1, %s4839_s17  }
 0x308   : > { %s2442_s10 = scalar_lea.sflag [#allocation19], %s2441_s29 }
 0x309   : > { %3774 = dma.done.wait (!%p3299_p7), %s2442_s10, 2048  }
 0x30a   : > { %3776 = vsyncadd (!%p3299_p7), %s2442_s10, 4294965248  ;;  %s37_s22 = sadd.s32 1, %s4836_s9   ;;  %s4840_s30 = sld [smem:[#allocation35_spill]] }
 0x30b   : > { %p34_p5 = scmp.ge.s32.totalorder %s37_s22, 4   ;;  %s4841_s20 = sld [smem:[#allocation30_spill]] }
 0x30c   : > { %s4842_s21 = sld [smem:[#allocation33_spill]]  ;;  %s4843_s17 = smov %s3783_s18 }
 0x30d   : > { %s4844_s18 = smov %s3787_s19  ;;  %36 = sbr.rel (!%p34_p5) target bundleno = 21 (0x15), region = 190 }
 0x310   : > { %s4845_s19 = smov %s4840_s30 }
 0x314   :  { %2456 = vsyncpa [#allocation3], 1 }
 0x315   :  { %2458 = vsyncpa [#allocation3 + $0x1], 1 }
 0x316   :  { %2459 = vsyncpa [#allocation6], 1 }
 0x317   :  { %2461 = vsyncpa [#allocation6 + $0x1], 1 }
 0x318   :  { %2462 = vsyncpa [#allocation9], 1 }
 0x319   :  { %2463 = vsyncpa [#allocation12], 1 }
 0x31a   :  { %2464 = vsyncpa [#allocation15], 1 }
 0x31b   :  { %2465 = vsyncpa [#allocation4], 1 }
 0x31c   :  { %2467 = vsyncpa [#allocation4 + $0x1], 1 }
 0x31d   :  { %2468 = vsyncpa [#allocation19], 1 }
 0x31e   :  { %2470 = vsyncpa [#allocation19 + $0x1], 1 }

</bundles_post_ra>
